<compile_context>
chip_gen: v6e
topology: v6e:2x2x1
jax: 0.10.0
libtpu: 0.0.40
codegen_flags: <defaults>
</compile_context>

<pallas_src>
import functools
import math

import jax
import jax.numpy as jnp
from jax import lax
from jax.experimental import pallas as pl
from jax.experimental.pallas import tpu as pltpu

BN_EPS = 1e-5
LANE = 128
NUM_CORE_SPLIT = 2                 # outer "parallel" grid axis (v7x megacore)
VMEM_LIMIT = 32 * 1024 * 1024      # safe on v5e/v6e (128 MiB) and v7x (64 MiB)


def _round_up(x, m):
    return ((x + m - 1) // m) * m


def _pad2(a, shape):
    pads = [(0, t - s) for s, t in zip(a.shape, shape)]
    if all(p == (0, 0) for p in pads):
        return a
    return jnp.pad(a, pads)


# -----------------------------------------------------------------------------
# Kernel
# -----------------------------------------------------------------------------
def _make_stats_kernel(depth, tile_n, tiles_per_core, n_real, emit_h):
    """Accumulate per-feature sum / sum-of-squares of the pre-BN activation of
    layer `depth` (1-based) into per-core partial accumulators of block shape
    (1, 8, C).  If `emit_h`, also write the pre-BN activation tile (fused
    "apply" output for the last layer)."""

    def kernel(*refs):
        x_ref = refs[0]
        sum_ref, sq_ref = refs[-2], refs[-1]
        h_out_ref = refs[-3] if emit_h else None
        c = pl.program_id(0)               # core-split index   ("parallel")
        t = pl.program_id(1)               # tile within split  ("arbitrary")
        g = c * tiles_per_core + t         # global N-tile index

        # fc1: bf16 x bf16 -> f32 accumulation on the MXU.
        h = jnp.dot(x_ref[...], refs[1][...],
                    preferred_element_type=jnp.float32)
        idx = 2
        for _ in range(depth - 1):
            scale_ref, shift_ref, w_ref = refs[idx], refs[idx + 1], refs[idx + 2]
            idx += 3
            # fused BN (precomputed scale/shift) + ReLU, then next fc in bf16.
            h = jnp.maximum(h * scale_ref[...] + shift_ref[...], 0.0)
            h = jnp.dot(h.astype(jnp.bfloat16), w_ref[...],
                        preferred_element_type=jnp.float32)

        if emit_h:
            h_out_ref[...] = h             # padded rows are sliced off later

        @pl.when(t == 0)
        def _init():
            sum_ref[...] = jnp.zeros_like(sum_ref)
            sq_ref[...] = jnp.zeros_like(sq_ref)

        def accumulate(hv):
            # (1, C) row sums broadcast into the aligned (1, 8, C) partials.
            sum_ref[...] += jnp.sum(hv, axis=0, keepdims=True)[None]
            sq_ref[...] += jnp.sum(hv * hv, axis=0, keepdims=True)[None]

        if depth == 1:
            # Zero-padded x rows give exactly-zero h1: no mask ever needed.
            accumulate(h)
        else:
            no_pad = (g + 1) * tile_n <= n_real

            @pl.when(no_pad)
            def _full():
                accumulate(h)

            @pl.when(jnp.logical_not(no_pad))
            def _masked():
                rows = g * tile_n + lax.broadcasted_iota(jnp.int32, h.shape, 0)
                accumulate(jnp.where(rows < n_real, h, 0.0))

    return kernel


# -----------------------------------------------------------------------------
# pallas_call wrapper
# -----------------------------------------------------------------------------
def _stats_pass(args, out_dim, depth, tile_n, tiles_per_core, n_real, flops,
                emit_h=False, n_pad=None):
    x = args[0]
    n_map = lambda c, t: (c * tiles_per_core + t, 0)
    const = lambda c, t: (0, 0)
    in_specs = ([pl.BlockSpec((tile_n, x.shape[1]), n_map)]
                + [pl.BlockSpec(a.shape, const) for a in args[1:]])

    acc_shape = jax.ShapeDtypeStruct((NUM_CORE_SPLIT, 8, out_dim), jnp.float32)
    acc_spec = pl.BlockSpec((1, 8, out_dim), lambda c, t: (c, 0, 0))
    out_shapes, out_specs = [], []
    if emit_h:
        out_shapes.append(jax.ShapeDtypeStruct((n_pad, out_dim), jnp.float32))
        out_specs.append(pl.BlockSpec((tile_n, out_dim), n_map))
    out_shapes += [acc_shape, acc_shape]
    out_specs += [acc_spec, acc_spec]

    in_bytes = sum(int(a.size) * a.dtype.itemsize for a in args)
    out_bytes = 2 * NUM_CORE_SPLIT * 8 * out_dim * 4
    if emit_h:
        out_bytes += int(n_pad) * out_dim * 4
    cost = pl.CostEstimate(flops=int(flops), transcendentals=0,
                           bytes_accessed=int(in_bytes + out_bytes))

    return pl.pallas_call(
        _make_stats_kernel(depth, tile_n, tiles_per_core, n_real, emit_h),
        out_shape=tuple(out_shapes),
        grid_spec=pltpu.PrefetchScalarGridSpec(
            num_scalar_prefetch=0,
            grid=(NUM_CORE_SPLIT, tiles_per_core),
            in_specs=in_specs,
            out_specs=tuple(out_specs)),
        compiler_params=pltpu.CompilerParams(
            dimension_semantics=("parallel", "arbitrary"),
            vmem_limit_bytes=VMEM_LIMIT),
        cost_estimate=cost,
    )(*args)


def _finalize_bn(psum, psq, n_real, gamma=None, beta=None):
    # Sum the per-core partials (row 0 of each (8, C) block carries the value).
    s = jnp.sum(psum[:, 0, :], axis=0, keepdims=True)     # (1, C)
    sq = jnp.sum(psq[:, 0, :], axis=0, keepdims=True)
    mean = s / n_real
    # TODO(synk): single-pass var = E[h^2] - mu^2 can cancel for |mean| >> std;
    # a centered second pass would be needed for such activations.
    var = jnp.maximum(sq / n_real - mean * mean, 0.0)
    inv = lax.rsqrt(var + BN_EPS)
    if gamma is None:                                      # affine=False
        return inv, -mean * inv
    scale = gamma * inv
    return scale, beta - mean * scale


def projection_forward(x, w1, g1, b1, w2, g2, b2, w3, *, tile_n=512):
    """x:[N,in]; w*: pre-transposed [in,out]; g*/b*: [C] BN affine params."""
    n, in_ch = x.shape
    hid = w1.shape[1]
    out_ch = w3.shape[1]

    in_p = _round_up(in_ch, LANE)
    hid_p = _round_up(hid, LANE)
    out_p = _round_up(out_ch, LANE)

    # Largest 16-aligned tile that still gives every core-split >= 1 tile.
    per_core = _round_up(max(1, -(-n // NUM_CORE_SPLIT)), 16)
    tile_n = max(16, min(_round_up(tile_n, 16), per_core))
    n_pad = _round_up(n, tile_n * NUM_CORE_SPLIT)
    tiles_per_core = n_pad // (tile_n * NUM_CORE_SPLIT)

    bf16, f32 = jnp.bfloat16, jnp.float32
    x_p = _pad2(x, (n_pad, in_p)).astype(bf16)
    w1_p = _pad2(w1, (in_p, hid_p)).astype(bf16)
    w2_p = _pad2(w2, (hid_p, hid_p)).astype(bf16)
    w3_p = _pad2(w3, (hid_p, out_p)).astype(bf16)
    g1_p = _pad2(g1.reshape(1, -1).astype(f32), (1, hid_p))
    b1_p = _pad2(b1.reshape(1, -1).astype(f32), (1, hid_p))
    g2_p = _pad2(g2.reshape(1, -1).astype(f32), (1, hid_p))
    b2_p = _pad2(b2.reshape(1, -1).astype(f32), (1, hid_p))

    mm1 = 2 * n_pad * in_p * hid_p
    mm2 = 2 * n_pad * hid_p * hid_p
    mm3 = 2 * n_pad * hid_p * out_p

    # ---- pass 1: stats of h1 = x @ W1 ----
    s1, q1 = _stats_pass((x_p, w1_p), hid_p, 1,
                         tile_n, tiles_per_core, n, mm1)
    sc1, sh1 = _finalize_bn(s1, q1, n, g1_p, b1_p)

    # ---- pass 2: stats of h2 = relu(bn1(h1)) @ W2 ----
    s2, q2 = _stats_pass((x_p, w1_p, sc1, sh1, w2_p), hid_p, 2,
                         tile_n, tiles_per_core, n, mm1 + mm2)
    sc2, sh2 = _finalize_bn(s2, q2, n, g2_p, b2_p)

    # ---- pass 3 (fused apply): stats of h3 = relu(bn2(h2)) @ W3, write h3 ----
    h3, s3, q3 = _stats_pass((x_p, w1_p, sc1, sh1, w2_p, sc2, sh2, w3_p),
                             out_p, 3, tile_n, tiles_per_core, n,
                             mm1 + mm2 + mm3, emit_h=True, n_pad=n_pad)
    sc3, sh3 = _finalize_bn(s3, q3, n)                     # BN3: affine=False

    # BN3 application + un-padding as one fused XLA elementwise.
    return h3[:n, :out_ch] * sc3[0, :out_ch] + sh3[0, :out_ch]


# -----------------------------------------------------------------------------
# Init helper + pure-JAX reference (mirrors the kernel's bf16 MXU precision)
# -----------------------------------------------------------------------------
def kaiming_uniform_a1(key, out_features, in_features):
    # nn.init.kaiming_uniform_(w, a=1): bound = sqrt(3 / fan_in)
    bound = math.sqrt(3.0 / in_features)
    return jax.random.uniform(key, (out_features, in_features),
                              minval=-bound, maxval=bound, dtype=jnp.float32)


def reference_forward(x, w1, g1, b1, w2, g2, b2, w3):
    def mm(a, w):   # same bf16-input / f32-accumulate precision as the kernel
        return jnp.dot(a.astype(jnp.bfloat16), w.astype(jnp.bfloat16),
                       preferred_element_type=jnp.float32)

    def bn(h, gamma=None, beta=None):
        mu = jnp.mean(h, axis=0, keepdims=True)
        var = jnp.mean((h - mu) * (h - mu), axis=0, keepdims=True)
        hn = (h - mu) * lax.rsqrt(var + BN_EPS)
        if gamma is not None:
            hn = hn * gamma + beta
        return hn

    h = jnp.maximum(bn(mm(x, w1), g1, b1), 0.0)
    h = jnp.maximum(bn(mm(h, w2), g2, b2), 0.0)
    return bn(mm(h, w3))


if __name__ == "__main__":
    # Small shapes consistent with Projection(in_ch, out_ch, hidden_ch).
    # N=200 with tile_n=64 -> n_pad=256, grid (2, 2): exercises the core-split,
    # multi-tile per-core accumulation, the masked last tile and lane padding.
    N, in_ch, hidden_ch, out_ch = 200, 96, 64, 48

    key = jax.random.PRNGKey(0)
    kx, k1, k2, k3 = jax.random.split(key, 4)

    x = jax.random.normal(kx, (N, in_ch), dtype=jnp.float32)

    # PyTorch Linear weight is [out, in]; pre-transpose to [in, out] for x @ W.
    w1 = kaiming_uniform_a1(k1, hidden_ch, in_ch).T        # [in_ch, hidden_ch]
    w2 = kaiming_uniform_a1(k2, hidden_ch, hidden_ch).T    # [hidden_ch, hidden_ch]
    w3 = kaiming_uniform_a1(k3, out_ch, hidden_ch).T       # [hidden_ch, out_ch]

    # BatchNorm affine params (PyTorch default init: gamma=1, beta=0).
    g1 = jnp.ones((hidden_ch,), jnp.float32)
    b1 = jnp.zeros((hidden_ch,), jnp.float32)
    g2 = jnp.ones((hidden_ch,), jnp.float32)
    b2 = jnp.zeros((hidden_ch,), jnp.float32)

    fwd = jax.jit(functools.partial(projection_forward, tile_n=64))
    out = jax.block_until_ready(fwd(x, w1, g1, b1, w2, g2, b2, w3))

    ref = reference_forward(x, w1, g1, b1, w2, g2, b2, w3)
    assert out.shape == (N, out_ch)
    max_err = float(jnp.max(jnp.abs(out - ref)))
    assert jnp.allclose(out, ref, atol=5e-3, rtol=5e-3), f"max abs err {max_err}"

    print("KERNEL_OK")
</pallas_src>

<mosaic_0001>
module attributes {stable_mosaic.version = 11 : i64} {
  func.func @kernel(%arg0: i32, %arg1: i32, %arg2: memref<64x128xbf16, #tpu.memory_space<vmem>>, %arg3: memref<128x128xbf16, #tpu.memory_space<vmem>>, %arg4: memref<1x8x128xf32, #tpu.memory_space<vmem>>, %arg5: memref<1x8x128xf32, #tpu.memory_space<vmem>>) attributes {dimension_semantics = [#tpu.dimension_semantics<parallel>, #tpu.dimension_semantics<arbitrary>], iteration_bounds = array<i64: 2, 2>, scalar_prefetch = 0 : i64, scratch_operands = 0 : i64, tpu.core_type = #tpu.core_type<tc>, window_params = [{transform_indices = @transform_0, window_bounds = array<i64: 64, 128>}, {pipeline_mode = #tpu.pipeline_mode<synchronous>, transform_indices = @transform_1, window_bounds = array<i64: 128, 128>}, {transform_indices = @transform_2, window_bounds = array<i64: 1, 8, 128>}, {transform_indices = @transform_3, window_bounds = array<i64: 1, 8, 128>}]} {
    %c0 = arith.constant 0 : index
    %c0_0 = arith.constant 0 : index
    %0 = vector.load %arg2[%c0, %c0_0] : memref<64x128xbf16, #tpu.memory_space<vmem>>, vector<64x128xbf16>
    %c0_1 = arith.constant 0 : index
    %c0_2 = arith.constant 0 : index
    %1 = vector.load %arg3[%c0_1, %c0_2] : memref<128x128xbf16, #tpu.memory_space<vmem>>, vector<128x128xbf16>
    %cst = arith.constant dense<0.000000e+00> : vector<64x128xf32>
    %2 = tpu.matmul %0, %1, %cst {dimension_numbers = #tpu.dot_dimension_numbers<[1], [0], [0], [1], [0, 0, 1, 1], [], []>} : vector<64x128xbf16>, vector<128x128xbf16>, vector<64x128xf32> -> vector<64x128xf32>
    %c0_i32 = arith.constant 0 : i32
    %3 = arith.cmpi eq, %arg1, %c0_i32 : i32
    %4 = arith.extui %3 : i1 to i32
    %c0_i32_3 = arith.constant 0 : i32
    %5 = arith.cmpi ne, %4, %c0_i32_3 : i32
    scf.if %5 {
      %cst_18 = arith.constant 0.000000e+00 : f32
      %21 = vector.broadcast %cst_18 : f32 to vector<1x8x128xf32>
      %c0_19 = arith.constant 0 : index
      %c0_20 = arith.constant 0 : index
      %c0_21 = arith.constant 0 : index
      %22 = vector.load %arg4[%c0_19, %c0_20, %c0_21] : memref<1x8x128xf32, #tpu.memory_space<vmem>>, vector<1x8x128xf32>
      tpu.vector_store %arg4[%c0_19, %c0_20, %c0_21], %21 {strides = array<i32>} : memref<1x8x128xf32, #tpu.memory_space<vmem>>, vector<1x8x128xf32>,
      %cst_22 = arith.constant 0.000000e+00 : f32
      %23 = vector.broadcast %cst_22 : f32 to vector<1x8x128xf32>
      %c0_23 = arith.constant 0 : index
      %c0_24 = arith.constant 0 : index
      %c0_25 = arith.constant 0 : index
      %24 = vector.load %arg5[%c0_23, %c0_24, %c0_25] : memref<1x8x128xf32, #tpu.memory_space<vmem>>, vector<1x8x128xf32>
      tpu.vector_store %arg5[%c0_23, %c0_24, %c0_25], %23 {strides = array<i32>} : memref<1x8x128xf32, #tpu.memory_space<vmem>>, vector<1x8x128xf32>,
    } else {
    }
    %c0_4 = arith.constant 0 : index
    %c0_5 = arith.constant 0 : index
    %c0_6 = arith.constant 0 : index
    %6 = vector.load %arg4[%c0_4, %c0_5, %c0_6] : memref<1x8x128xf32, #tpu.memory_space<vmem>>, vector<1x8x128xf32>
    %cst_7 = arith.constant dense<0.000000e+00> : vector<128xf32>
    %7 = vector.multi_reduction <add>, %2, %cst_7 [0] : vector<64x128xf32> to vector<128xf32>
    %8 = vector.shape_cast %7 : vector<128xf32> to vector<1x128xf32>
    %9 = vector.shape_cast %8 : vector<1x128xf32> to vector<1x1x128xf32>
    %10 = vector.broadcast %9 : vector<1x1x128xf32> to vector<1x8x128xf32>
    %11 = arith.addf %6, %10 : vector<1x8x128xf32>
    %c0_8 = arith.constant 0 : index
    %c0_9 = arith.constant 0 : index
    %c0_10 = arith.constant 0 : index
    %12 = vector.load %arg4[%c0_8, %c0_9, %c0_10] : memref<1x8x128xf32, #tpu.memory_space<vmem>>, vector<1x8x128xf32>
    tpu.vector_store %arg4[%c0_8, %c0_9, %c0_10], %11 {strides = array<i32>} : memref<1x8x128xf32, #tpu.memory_space<vmem>>, vector<1x8x128xf32>,
    %c0_11 = arith.constant 0 : index
    %c0_12 = arith.constant 0 : index
    %c0_13 = arith.constant 0 : index
    %13 = vector.load %arg5[%c0_11, %c0_12, %c0_13] : memref<1x8x128xf32, #tpu.memory_space<vmem>>, vector<1x8x128xf32>
    %14 = arith.mulf %2, %2 : vector<64x128xf32>
    %cst_14 = arith.constant dense<0.000000e+00> : vector<128xf32>
    %15 = vector.multi_reduction <add>, %14, %cst_14 [0] : vector<64x128xf32> to vector<128xf32>
    %16 = vector.shape_cast %15 : vector<128xf32> to vector<1x128xf32>
    %17 = vector.shape_cast %16 : vector<1x128xf32> to vector<1x1x128xf32>
    %18 = vector.broadcast %17 : vector<1x1x128xf32> to vector<1x8x128xf32>
    %19 = arith.addf %13, %18 : vector<1x8x128xf32>
    %c0_15 = arith.constant 0 : index
    %c0_16 = arith.constant 0 : index
    %c0_17 = arith.constant 0 : index
    %20 = vector.load %arg5[%c0_15, %c0_16, %c0_17] : memref<1x8x128xf32, #tpu.memory_space<vmem>>, vector<1x8x128xf32>
    tpu.vector_store %arg5[%c0_15, %c0_16, %c0_17], %19 {strides = array<i32>} : memref<1x8x128xf32, #tpu.memory_space<vmem>>, vector<1x8x128xf32>,
    return
  }
  func.func @transform_0(%arg0: i32, %arg1: i32) -> (i32, i32) {
    %c2_i32 = arith.constant 2 : i32
    %0 = arith.muli %arg0, %c2_i32 : i32
    %1 = arith.addi %0, %arg1 : i32
    %c0_i32 = arith.constant 0 : i32
    %c0_i32_0 = arith.constant 0 : i32
    return %1, %c0_i32 : i32, i32
  }
  func.func @transform_1(%arg0: i32, %arg1: i32) -> (i32, i32) {
    %c0_i32 = arith.constant 0 : i32
    %c0_i32_0 = arith.constant 0 : i32
    %c0_i32_1 = arith.constant 0 : i32
    return %c0_i32, %c0_i32_0 : i32, i32
  }
  func.func @transform_2(%arg0: i32, %arg1: i32) -> (i32, i32, i32) {
    %c0_i32 = arith.constant 0 : i32
    %c0_i32_0 = arith.constant 0 : i32
    %c0_i32_1 = arith.constant 0 : i32
    return %arg0, %c0_i32, %c0_i32_0 : i32, i32, i32
  }
  func.func @transform_3(%arg0: i32, %arg1: i32) -> (i32, i32, i32) {
    %c0_i32 = arith.constant 0 : i32
    %c0_i32_0 = arith.constant 0 : i32
    %c0_i32_1 = arith.constant 0 : i32
    return %arg0, %c0_i32, %c0_i32_0 : i32, i32, i32
  }
}

module attributes {stable_mosaic.version = 11 : i64} {
  func.func @kernel(%arg0: i32, %arg1: i32, %arg2: memref<64x128xbf16, #tpu.memory_space<vmem>>, %arg3: memref<128x128xbf16, #tpu.memory_space<vmem>>, %arg4: memref<1x128xf32, #tpu.memory_space<vmem>>, %arg5: memref<1x128xf32, #tpu.memory_space<vmem>>, %arg6: memref<128x128xbf16, #tpu.memory_space<vmem>>, %arg7: memref<1x128xf32, #tpu.memory_space<vmem>>, %arg8: memref<1x128xf32, #tpu.memory_space<vmem>>, %arg9: memref<128x128xbf16, #tpu.memory_space<vmem>>, %arg10: memref<64x128xf32, #tpu.memory_space<vmem>>, %arg11: memref<1x8x128xf32, #tpu.memory_space<vmem>>, %arg12: memref<1x8x128xf32, #tpu.memory_space<vmem>>) attributes {dimension_semantics = [#tpu.dimension_semantics<parallel>, #tpu.dimension_semantics<arbitrary>], iteration_bounds = array<i64: 2, 2>, scalar_prefetch = 0 : i64, scratch_operands = 0 : i64, tpu.core_type = #tpu.core_type<tc>, window_params = [{transform_indices = @transform_0, window_bounds = array<i64: 64, 128>}, {pipeline_mode = #tpu.pipeline_mode<synchronous>, transform_indices = @transform_1, window_bounds = array<i64: 128, 128>}, {pipeline_mode = #tpu.pipeline_mode<synchronous>, transform_indices = @transform_2, window_bounds = array<i64: 1, 128>}, {pipeline_mode = #tpu.pipeline_mode<synchronous>, transform_indices = @transform_3, window_bounds = array<i64: 1, 128>}, {pipeline_mode = #tpu.pipeline_mode<synchronous>, transform_indices = @transform_4, window_bounds = array<i64: 128, 128>}, {pipeline_mode = #tpu.pipeline_mode<synchronous>, transform_indices = @transform_5, window_bounds = array<i64: 1, 128>}, {pipeline_mode = #tpu.pipeline_mode<synchronous>, transform_indices = @transform_6, window_bounds = array<i64: 1, 128>}, {pipeline_mode = #tpu.pipeline_mode<synchronous>, transform_indices = @transform_7, window_bounds = array<i64: 128, 128>}, {transform_indices = @transform_8, window_bounds = array<i64: 64, 128>}, {transform_indices = @transform_9, window_bounds = array<i64: 1, 8, 128>}, {transform_indices = @transform_10, window_bounds = array<i64: 1, 8, 128>}]} {
    %c2_i32 = arith.constant 2 : i32
    %0 = arith.muli %arg0, %c2_i32 : i32
    %1 = arith.addi %0, %arg1 : i32
    %c0 = arith.constant 0 : index
    %c0_0 = arith.constant 0 : index
    %2 = vector.load %arg2[%c0, %c0_0] : memref<64x128xbf16, #tpu.memory_space<vmem>>, vector<64x128xbf16>
    %c0_1 = arith.constant 0 : index
    %c0_2 = arith.constant 0 : index
    %3 = vector.load %arg3[%c0_1, %c0_2] : memref<128x128xbf16, #tpu.memory_space<vmem>>, vector<128x128xbf16>
    %cst = arith.constant dense<0.000000e+00> : vector<64x128xf32>
    %4 = tpu.matmul %2, %3, %cst {dimension_numbers = #tpu.dot_dimension_numbers<[1], [0], [0], [1], [0, 0, 1, 1], [], []>} : vector<64x128xbf16>, vector<128x128xbf16>, vector<64x128xf32> -> vector<64x128xf32>
    %c0_3 = arith.constant 0 : index
    %c0_4 = arith.constant 0 : index
    %5 = vector.load %arg4[%c0_3, %c0_4] : memref<1x128xf32, #tpu.memory_space<vmem>>, vector<1x128xf32>
    %6 = vector.broadcast %5 : vector<1x128xf32> to vector<64x128xf32>
    %7 = arith.mulf %4, %6 : vector<64x128xf32>
    %c0_5 = arith.constant 0 : index
    %c0_6 = arith.constant 0 : index
    %8 = vector.load %arg5[%c0_5, %c0_6] : memref<1x128xf32, #tpu.memory_space<vmem>>, vector<1x128xf32>
    %9 = vector.broadcast %8 : vector<1x128xf32> to vector<64x128xf32>
    %10 = arith.addf %7, %9 : vector<64x128xf32>
    %cst_7 = arith.constant 0.000000e+00 : f32
    %11 = vector.broadcast %cst_7 : f32 to vector<64x128xf32>
    %12 = arith.maximumf %10, %11 : vector<64x128xf32>
    %13 = arith.truncf %12 : vector<64x128xf32> to vector<64x128xbf16>
    %c0_8 = arith.constant 0 : index
    %c0_9 = arith.constant 0 : index
    %14 = vector.load %arg6[%c0_8, %c0_9] : memref<128x128xbf16, #tpu.memory_space<vmem>>, vector<128x128xbf16>
    %cst_10 = arith.constant dense<0.000000e+00> : vector<64x128xf32>
    %15 = tpu.matmul %13, %14, %cst_10 {dimension_numbers = #tpu.dot_dimension_numbers<[1], [0], [0], [1], [0, 0, 1, 1], [], []>} : vector<64x128xbf16>, vector<128x128xbf16>, vector<64x128xf32> -> vector<64x128xf32>
    %c0_11 = arith.constant 0 : index
    %c0_12 = arith.constant 0 : index
    %16 = vector.load %arg7[%c0_11, %c0_12] : memref<1x128xf32, #tpu.memory_space<vmem>>, vector<1x128xf32>
    %17 = vector.broadcast %16 : vector<1x128xf32> to vector<64x128xf32>
    %18 = arith.mulf %15, %17 : vector<64x128xf32>
    %c0_13 = arith.constant 0 : index
    %c0_14 = arith.constant 0 : index
    %19 = vector.load %arg8[%c0_13, %c0_14] : memref<1x128xf32, #tpu.memory_space<vmem>>, vector<1x128xf32>
    %20 = vector.broadcast %19 : vector<1x128xf32> to vector<64x128xf32>
    %21 = arith.addf %18, %20 : vector<64x128xf32>
    %cst_15 = arith.constant 0.000000e+00 : f32
    %22 = vector.broadcast %cst_15 : f32 to vector<64x128xf32>
    %23 = arith.maximumf %21, %22 : vector<64x128xf32>
    %24 = arith.truncf %23 : vector<64x128xf32> to vector<64x128xbf16>
    %c0_16 = arith.constant 0 : index
    %c0_17 = arith.constant 0 : index
    %25 = vector.load %arg9[%c0_16, %c0_17] : memref<128x128xbf16, #tpu.memory_space<vmem>>, vector<128x128xbf16>
    %cst_18 = arith.constant dense<0.000000e+00> : vector<64x128xf32>
    %26 = tpu.matmul %24, %25, %cst_18 {dimension_numbers = #tpu.dot_dimension_numbers<[1], [0], [0], [1], [0, 0, 1, 1], [], []>} : vector<64x128xbf16>, vector<128x128xbf16>, vector<64x128xf32> -> vector<64x128xf32>
    %c0_19 = arith.constant 0 : index
    %c0_20 = arith.constant 0 : index
    %27 = vector.load %arg10[%c0_19, %c0_20] : memref<64x128xf32, #tpu.memory_space<vmem>>, vector<64x128xf32>
    tpu.vector_store %arg10[%c0_19, %c0_20], %26 {strides = array<i32>} : memref<64x128xf32, #tpu.memory_space<vmem>>, vector<64x128xf32>,
    %c0_i32 = arith.constant 0 : i32
    %28 = arith.cmpi eq, %arg1, %c0_i32 : i32
    %29 = arith.extui %28 : i1 to i32
    %c0_i32_21 = arith.constant 0 : i32
    %30 = arith.cmpi ne, %29, %c0_i32_21 : i32
    scf.if %30 {
      %cst_24 = arith.constant 0.000000e+00 : f32
      %39 = vector.broadcast %cst_24 : f32 to vector<1x8x128xf32>
      %c0_25 = arith.constant 0 : index
      %c0_26 = arith.constant 0 : index
      %c0_27 = arith.constant 0 : index
      %40 = vector.load %arg11[%c0_25, %c0_26, %c0_27] : memref<1x8x128xf32, #tpu.memory_space<vmem>>, vector<1x8x128xf32>
      tpu.vector_store %arg11[%c0_25, %c0_26, %c0_27], %39 {strides = array<i32>} : memref<1x8x128xf32, #tpu.memory_space<vmem>>, vector<1x8x128xf32>,
      %cst_28 = arith.constant 0.000000e+00 : f32
      %41 = vector.broadcast %cst_28 : f32 to vector<1x8x128xf32>
      %c0_29 = arith.constant 0 : index
      %c0_30 = arith.constant 0 : index
      %c0_31 = arith.constant 0 : index
      %42 = vector.load %arg12[%c0_29, %c0_30, %c0_31] : memref<1x8x128xf32, #tpu.memory_space<vmem>>, vector<1x8x128xf32>
      tpu.vector_store %arg12[%c0_29, %c0_30, %c0_31], %41 {strides = array<i32>} : memref<1x8x128xf32, #tpu.memory_space<vmem>>, vector<1x8x128xf32>,
    } else {
    }
    %c1_i32 = arith.constant 1 : i32
    %31 = arith.addi %1, %c1_i32 : i32
    %c64_i32 = arith.constant 64 : i32
    %32 = arith.muli %31, %c64_i32 : i32
    %c200_i32 = arith.constant 200 : i32
    %33 = arith.cmpi sle, %32, %c200_i32 : i32
    %34 = arith.extui %33 : i1 to i32
    %c0_i32_22 = arith.constant 0 : i32
    %35 = arith.cmpi ne, %34, %c0_i32_22 : i32
    scf.if %35 {
      %c0_24 = arith.constant 0 : index
      %c0_25 = arith.constant 0 : index
      %c0_26 = arith.constant 0 : index
      %39 = vector.load %arg11[%c0_24, %c0_25, %c0_26] : memref<1x8x128xf32, #tpu.memory_space<vmem>>, vector<1x8x128xf32>
      %cst_27 = arith.constant dense<0.000000e+00> : vector<128xf32>
      %40 = vector.multi_reduction <add>, %26, %cst_27 [0] : vector<64x128xf32> to vector<128xf32>
      %41 = vector.shape_cast %40 : vector<128xf32> to vector<1x128xf32>
      %42 = vector.shape_cast %41 : vector<1x128xf32> to vector<1x1x128xf32>
      %43 = vector.broadcast %42 : vector<1x1x128xf32> to vector<1x8x128xf32>
      %44 = arith.addf %39, %43 : vector<1x8x128xf32>
      %c0_28 = arith.constant 0 : index
      %c0_29 = arith.constant 0 : index
      %c0_30 = arith.constant 0 : index
      %45 = vector.load %arg11[%c0_28, %c0_29, %c0_30] : memref<1x8x128xf32, #tpu.memory_space<vmem>>, vector<1x8x128xf32>
      tpu.vector_store %arg11[%c0_28, %c0_29, %c0_30], %44 {strides = array<i32>} : memref<1x8x128xf32, #tpu.memory_space<vmem>>, vector<1x8x128xf32>,
      %c0_31 = arith.constant 0 : index
      %c0_32 = arith.constant 0 : index
      %c0_33 = arith.constant 0 : index
      %46 = vector.load %arg12[%c0_31, %c0_32, %c0_33] : memref<1x8x128xf32, #tpu.memory_space<vmem>>, vector<1x8x128xf32>
      %47 = arith.mulf %26, %26 : vector<64x128xf32>
      %cst_34 = arith.constant dense<0.000000e+00> : vector<128xf32>
      %48 = vector.multi_reduction <add>, %47, %cst_34 [0] : vector<64x128xf32> to vector<128xf32>
      %49 = vector.shape_cast %48 : vector<128xf32> to vector<1x128xf32>
      %50 = vector.shape_cast %49 : vector<1x128xf32> to vector<1x1x128xf32>
      %51 = vector.broadcast %50 : vector<1x1x128xf32> to vector<1x8x128xf32>
      %52 = arith.addf %46, %51 : vector<1x8x128xf32>
      %c0_35 = arith.constant 0 : index
      %c0_36 = arith.constant 0 : index
      %c0_37 = arith.constant 0 : index
      %53 = vector.load %arg12[%c0_35, %c0_36, %c0_37] : memref<1x8x128xf32, #tpu.memory_space<vmem>>, vector<1x8x128xf32>
      tpu.vector_store %arg12[%c0_35, %c0_36, %c0_37], %52 {strides = array<i32>} : memref<1x8x128xf32, #tpu.memory_space<vmem>>, vector<1x8x128xf32>,
    } else {
    }
    %true = arith.constant true
    %36 = arith.xori %33, %true : i1
    %37 = arith.extui %36 : i1 to i32
    %c0_i32_23 = arith.constant 0 : i32
    %38 = arith.cmpi ne, %37, %c0_i32_23 : i32
    scf.if %38 {
      %c64_i32_24 = arith.constant 64 : i32
      %39 = arith.muli %1, %c64_i32_24 : i32
      %40 = tpu.iota {dimensions = array<i32: 0>} : vector<64x128xi32>
      %41 = vector.broadcast %39 : i32 to vector<64x128xi32>
      %42 = arith.addi %41, %40 : vector<64x128xi32>
      %c200_i32_25 = arith.constant 200 : i32
      %43 = vector.broadcast %c200_i32_25 : i32 to vector<64x128xi32>
      %44 = arith.cmpi slt, %42, %43 : vector<64x128xi32>
      %cst_26 = arith.constant 0.000000e+00 : f32
      %45 = vector.broadcast %cst_26 : f32 to vector<64x128xf32>
      %46 = arith.select %44, %26, %45 : vector<64x128xi1>, vector<64x128xf32>
      %c0_27 = arith.constant 0 : index
      %c0_28 = arith.constant 0 : index
      %c0_29 = arith.constant 0 : index
      %47 = vector.load %arg11[%c0_27, %c0_28, %c0_29] : memref<1x8x128xf32, #tpu.memory_space<vmem>>, vector<1x8x128xf32>
      %cst_30 = arith.constant dense<0.000000e+00> : vector<128xf32>
      %48 = vector.multi_reduction <add>, %46, %cst_30 [0] : vector<64x128xf32> to vector<128xf32>
      %49 = vector.shape_cast %48 : vector<128xf32> to vector<1x128xf32>
      %50 = vector.shape_cast %49 : vector<1x128xf32> to vector<1x1x128xf32>
      %51 = vector.broadcast %50 : vector<1x1x128xf32> to vector<1x8x128xf32>
      %52 = arith.addf %47, %51 : vector<1x8x128xf32>
      %c0_31 = arith.constant 0 : index
      %c0_32 = arith.constant 0 : index
      %c0_33 = arith.constant 0 : index
      %53 = vector.load %arg11[%c0_31, %c0_32, %c0_33] : memref<1x8x128xf32, #tpu.memory_space<vmem>>, vector<1x8x128xf32>
      tpu.vector_store %arg11[%c0_31, %c0_32, %c0_33], %52 {strides = array<i32>} : memref<1x8x128xf32, #tpu.memory_space<vmem>>, vector<1x8x128xf32>,
      %c0_34 = arith.constant 0 : index
      %c0_35 = arith.constant 0 : index
      %c0_36 = arith.constant 0 : index
      %54 = vector.load %arg12[%c0_34, %c0_35, %c0_36] : memref<1x8x128xf32, #tpu.memory_space<vmem>>, vector<1x8x128xf32>
      %55 = arith.mulf %46, %46 : vector<64x128xf32>
      %cst_37 = arith.constant dense<0.000000e+00> : vector<128xf32>
      %56 = vector.multi_reduction <add>, %55, %cst_37 [0] : vector<64x128xf32> to vector<128xf32>
      %57 = vector.shape_cast %56 : vector<128xf32> to vector<1x128xf32>
      %58 = vector.shape_cast %57 : vector<1x128xf32> to vector<1x1x128xf32>
      %59 = vector.broadcast %58 : vector<1x1x128xf32> to vector<1x8x128xf32>
      %60 = arith.addf %54, %59 : vector<1x8x128xf32>
      %c0_38 = arith.constant 0 : index
      %c0_39 = arith.constant 0 : index
      %c0_40 = arith.constant 0 : index
      %61 = vector.load %arg12[%c0_38, %c0_39, %c0_40] : memref<1x8x128xf32, #tpu.memory_space<vmem>>, vector<1x8x128xf32>
      tpu.vector_store %arg12[%c0_38, %c0_39, %c0_40], %60 {strides = array<i32>} : memref<1x8x128xf32, #tpu.memory_space<vmem>>, vector<1x8x128xf32>,
    } else {
    }
    return
  }
  func.func @transform_0(%arg0: i32, %arg1: i32) -> (i32, i32) {
    %c2_i32 = arith.constant 2 : i32
    %0 = arith.muli %arg0, %c2_i32 : i32
    %1 = arith.addi %0, %arg1 : i32
    %c0_i32 = arith.constant 0 : i32
    %c0_i32_0 = arith.constant 0 : i32
    return %1, %c0_i32 : i32, i32
  }
  func.func @transform_1(%arg0: i32, %arg1: i32) -> (i32, i32) {
    %c0_i32 = arith.constant 0 : i32
    %c0_i32_0 = arith.constant 0 : i32
    %c0_i32_1 = arith.constant 0 : i32
    return %c0_i32, %c0_i32_0 : i32, i32
  }
  func.func @transform_2(%arg0: i32, %arg1: i32) -> (i32, i32) {
    %c0_i32 = arith.constant 0 : i32
    %c0_i32_0 = arith.constant 0 : i32
    %c0_i32_1 = arith.constant 0 : i32
    return %c0_i32, %c0_i32_0 : i32, i32
  }
  func.func @transform_3(%arg0: i32, %arg1: i32) -> (i32, i32) {
    %c0_i32 = arith.constant 0 : i32
    %c0_i32_0 = arith.constant 0 : i32
    %c0_i32_1 = arith.constant 0 : i32
    return %c0_i32, %c0_i32_0 : i32, i32
  }
  func.func @transform_4(%arg0: i32, %arg1: i32) -> (i32, i32) {
    %c0_i32 = arith.constant 0 : i32
    %c0_i32_0 = arith.constant 0 : i32
    %c0_i32_1 = arith.constant 0 : i32
    return %c0_i32, %c0_i32_0 : i32, i32
  }
  func.func @transform_5(%arg0: i32, %arg1: i32) -> (i32, i32) {
    %c0_i32 = arith.constant 0 : i32
    %c0_i32_0 = arith.constant 0 : i32
    %c0_i32_1 = arith.constant 0 : i32
    return %c0_i32, %c0_i32_0 : i32, i32
  }
  func.func @transform_6(%arg0: i32, %arg1: i32) -> (i32, i32) {
    %c0_i32 = arith.constant 0 : i32
    %c0_i32_0 = arith.constant 0 : i32
    %c0_i32_1 = arith.constant 0 : i32
    return %c0_i32, %c0_i32_0 : i32, i32
  }
  func.func @transform_7(%arg0: i32, %arg1: i32) -> (i32, i32) {
    %c0_i32 = arith.constant 0 : i32
    %c0_i32_0 = arith.constant 0 : i32
    %c0_i32_1 = arith.constant 0 : i32
    return %c0_i32, %c0_i32_0 : i32, i32
  }
  func.func @transform_8(%arg0: i32, %arg1: i32) -> (i32, i32) {
    %c2_i32 = arith.constant 2 : i32
    %0 = arith.muli %arg0, %c2_i32 : i32
    %1 = arith.addi %0, %arg1 : i32
    %c0_i32 = arith.constant 0 : i32
    %c0_i32_0 = arith.constant 0 : i32
    return %1, %c0_i32 : i32, i32
  }
  func.func @transform_9(%arg0: i32, %arg1: i32) -> (i32, i32, i32) {
    %c0_i32 = arith.constant 0 : i32
    %c0_i32_0 = arith.constant 0 : i32
    %c0_i32_1 = arith.constant 0 : i32
    return %arg0, %c0_i32, %c0_i32_0 : i32, i32, i32
  }
  func.func @transform_10(%arg0: i32, %arg1: i32) -> (i32, i32, i32) {
    %c0_i32 = arith.constant 0 : i32
    %c0_i32_0 = arith.constant 0 : i32
    %c0_i32_1 = arith.constant 0 : i32
    return %arg0, %c0_i32, %c0_i32_0 : i32, i32, i32
  }
}

module attributes {stable_mosaic.version = 11 : i64} {
  func.func @kernel(%arg0: i32, %arg1: i32, %arg2: memref<64x128xbf16, #tpu.memory_space<vmem>>, %arg3: memref<128x128xbf16, #tpu.memory_space<vmem>>, %arg4: memref<1x128xf32, #tpu.memory_space<vmem>>, %arg5: memref<1x128xf32, #tpu.memory_space<vmem>>, %arg6: memref<128x128xbf16, #tpu.memory_space<vmem>>, %arg7: memref<1x8x128xf32, #tpu.memory_space<vmem>>, %arg8: memref<1x8x128xf32, #tpu.memory_space<vmem>>) attributes {dimension_semantics = [#tpu.dimension_semantics<parallel>, #tpu.dimension_semantics<arbitrary>], iteration_bounds = array<i64: 2, 2>, scalar_prefetch = 0 : i64, scratch_operands = 0 : i64, tpu.core_type = #tpu.core_type<tc>, window_params = [{transform_indices = @transform_0, window_bounds = array<i64: 64, 128>}, {pipeline_mode = #tpu.pipeline_mode<synchronous>, transform_indices = @transform_1, window_bounds = array<i64: 128, 128>}, {pipeline_mode = #tpu.pipeline_mode<synchronous>, transform_indices = @transform_2, window_bounds = array<i64: 1, 128>}, {pipeline_mode = #tpu.pipeline_mode<synchronous>, transform_indices = @transform_3, window_bounds = array<i64: 1, 128>}, {pipeline_mode = #tpu.pipeline_mode<synchronous>, transform_indices = @transform_4, window_bounds = array<i64: 128, 128>}, {transform_indices = @transform_5, window_bounds = array<i64: 1, 8, 128>}, {transform_indices = @transform_6, window_bounds = array<i64: 1, 8, 128>}]} {
    %c2_i32 = arith.constant 2 : i32
    %0 = arith.muli %arg0, %c2_i32 : i32
    %1 = arith.addi %0, %arg1 : i32
    %c0 = arith.constant 0 : index
    %c0_0 = arith.constant 0 : index
    %2 = vector.load %arg2[%c0, %c0_0] : memref<64x128xbf16, #tpu.memory_space<vmem>>, vector<64x128xbf16>
    %c0_1 = arith.constant 0 : index
    %c0_2 = arith.constant 0 : index
    %3 = vector.load %arg3[%c0_1, %c0_2] : memref<128x128xbf16, #tpu.memory_space<vmem>>, vector<128x128xbf16>
    %cst = arith.constant dense<0.000000e+00> : vector<64x128xf32>
    %4 = tpu.matmul %2, %3, %cst {dimension_numbers = #tpu.dot_dimension_numbers<[1], [0], [0], [1], [0, 0, 1, 1], [], []>} : vector<64x128xbf16>, vector<128x128xbf16>, vector<64x128xf32> -> vector<64x128xf32>
    %c0_3 = arith.constant 0 : index
    %c0_4 = arith.constant 0 : index
    %5 = vector.load %arg4[%c0_3, %c0_4] : memref<1x128xf32, #tpu.memory_space<vmem>>, vector<1x128xf32>
    %6 = vector.broadcast %5 : vector<1x128xf32> to vector<64x128xf32>
    %7 = arith.mulf %4, %6 : vector<64x128xf32>
    %c0_5 = arith.constant 0 : index
    %c0_6 = arith.constant 0 : index
    %8 = vector.load %arg5[%c0_5, %c0_6] : memref<1x128xf32, #tpu.memory_space<vmem>>, vector<1x128xf32>
    %9 = vector.broadcast %8 : vector<1x128xf32> to vector<64x128xf32>
    %10 = arith.addf %7, %9 : vector<64x128xf32>
    %cst_7 = arith.constant 0.000000e+00 : f32
    %11 = vector.broadcast %cst_7 : f32 to vector<64x128xf32>
    %12 = arith.maximumf %10, %11 : vector<64x128xf32>
    %13 = arith.truncf %12 : vector<64x128xf32> to vector<64x128xbf16>
    %c0_8 = arith.constant 0 : index
    %c0_9 = arith.constant 0 : index
    %14 = vector.load %arg6[%c0_8, %c0_9] : memref<128x128xbf16, #tpu.memory_space<vmem>>, vector<128x128xbf16>
    %cst_10 = arith.constant dense<0.000000e+00> : vector<64x128xf32>
    %15 = tpu.matmul %13, %14, %cst_10 {dimension_numbers = #tpu.dot_dimension_numbers<[1], [0], [0], [1], [0, 0, 1, 1], [], []>} : vector<64x128xbf16>, vector<128x128xbf16>, vector<64x128xf32> -> vector<64x128xf32>
    %c0_i32 = arith.constant 0 : i32
    %16 = arith.cmpi eq, %arg1, %c0_i32 : i32
    %17 = arith.extui %16 : i1 to i32
    %c0_i32_11 = arith.constant 0 : i32
    %18 = arith.cmpi ne, %17, %c0_i32_11 : i32
    scf.if %18 {
      %cst_14 = arith.constant 0.000000e+00 : f32
      %27 = vector.broadcast %cst_14 : f32 to vector<1x8x128xf32>
      %c0_15 = arith.constant 0 : index
      %c0_16 = arith.constant 0 : index
      %c0_17 = arith.constant 0 : index
      %28 = vector.load %arg7[%c0_15, %c0_16, %c0_17] : memref<1x8x128xf32, #tpu.memory_space<vmem>>, vector<1x8x128xf32>
      tpu.vector_store %arg7[%c0_15, %c0_16, %c0_17], %27 {strides = array<i32>} : memref<1x8x128xf32, #tpu.memory_space<vmem>>, vector<1x8x128xf32>,
      %cst_18 = arith.constant 0.000000e+00 : f32
      %29 = vector.broadcast %cst_18 : f32 to vector<1x8x128xf32>
      %c0_19 = arith.constant 0 : index
      %c0_20 = arith.constant 0 : index
      %c0_21 = arith.constant 0 : index
      %30 = vector.load %arg8[%c0_19, %c0_20, %c0_21] : memref<1x8x128xf32, #tpu.memory_space<vmem>>, vector<1x8x128xf32>
      tpu.vector_store %arg8[%c0_19, %c0_20, %c0_21], %29 {strides = array<i32>} : memref<1x8x128xf32, #tpu.memory_space<vmem>>, vector<1x8x128xf32>,
    } else {
    }
    %c1_i32 = arith.constant 1 : i32
    %19 = arith.addi %1, %c1_i32 : i32
    %c64_i32 = arith.constant 64 : i32
    %20 = arith.muli %19, %c64_i32 : i32
    %c200_i32 = arith.constant 200 : i32
    %21 = arith.cmpi sle, %20, %c200_i32 : i32
    %22 = arith.extui %21 : i1 to i32
    %c0_i32_12 = arith.constant 0 : i32
    %23 = arith.cmpi ne, %22, %c0_i32_12 : i32
    scf.if %23 {
      %c0_14 = arith.constant 0 : index
      %c0_15 = arith.constant 0 : index
      %c0_16 = arith.constant 0 : index
      %27 = vector.load %arg7[%c0_14, %c0_15, %c0_16] : memref<1x8x128xf32, #tpu.memory_space<vmem>>, vector<1x8x128xf32>
      %cst_17 = arith.constant dense<0.000000e+00> : vector<128xf32>
      %28 = vector.multi_reduction <add>, %15, %cst_17 [0] : vector<64x128xf32> to vector<128xf32>
      %29 = vector.shape_cast %28 : vector<128xf32> to vector<1x128xf32>
      %30 = vector.shape_cast %29 : vector<1x128xf32> to vector<1x1x128xf32>
      %31 = vector.broadcast %30 : vector<1x1x128xf32> to vector<1x8x128xf32>
      %32 = arith.addf %27, %31 : vector<1x8x128xf32>
      %c0_18 = arith.constant 0 : index
      %c0_19 = arith.constant 0 : index
      %c0_20 = arith.constant 0 : index
      %33 = vector.load %arg7[%c0_18, %c0_19, %c0_20] : memref<1x8x128xf32, #tpu.memory_space<vmem>>, vector<1x8x128xf32>
      tpu.vector_store %arg7[%c0_18, %c0_19, %c0_20], %32 {strides = array<i32>} : memref<1x8x128xf32, #tpu.memory_space<vmem>>, vector<1x8x128xf32>,
      %c0_21 = arith.constant 0 : index
      %c0_22 = arith.constant 0 : index
      %c0_23 = arith.constant 0 : index
      %34 = vector.load %arg8[%c0_21, %c0_22, %c0_23] : memref<1x8x128xf32, #tpu.memory_space<vmem>>, vector<1x8x128xf32>
      %35 = arith.mulf %15, %15 : vector<64x128xf32>
      %cst_24 = arith.constant dense<0.000000e+00> : vector<128xf32>
      %36 = vector.multi_reduction <add>, %35, %cst_24 [0] : vector<64x128xf32> to vector<128xf32>
      %37 = vector.shape_cast %36 : vector<128xf32> to vector<1x128xf32>
      %38 = vector.shape_cast %37 : vector<1x128xf32> to vector<1x1x128xf32>
      %39 = vector.broadcast %38 : vector<1x1x128xf32> to vector<1x8x128xf32>
      %40 = arith.addf %34, %39 : vector<1x8x128xf32>
      %c0_25 = arith.constant 0 : index
      %c0_26 = arith.constant 0 : index
      %c0_27 = arith.constant 0 : index
      %41 = vector.load %arg8[%c0_25, %c0_26, %c0_27] : memref<1x8x128xf32, #tpu.memory_space<vmem>>, vector<1x8x128xf32>
      tpu.vector_store %arg8[%c0_25, %c0_26, %c0_27], %40 {strides = array<i32>} : memref<1x8x128xf32, #tpu.memory_space<vmem>>, vector<1x8x128xf32>,
    } else {
    }
    %true = arith.constant true
    %24 = arith.xori %21, %true : i1
    %25 = arith.extui %24 : i1 to i32
    %c0_i32_13 = arith.constant 0 : i32
    %26 = arith.cmpi ne, %25, %c0_i32_13 : i32
    scf.if %26 {
      %c64_i32_14 = arith.constant 64 : i32
      %27 = arith.muli %1, %c64_i32_14 : i32
      %28 = tpu.iota {dimensions = array<i32: 0>} : vector<64x128xi32>
      %29 = vector.broadcast %27 : i32 to vector<64x128xi32>
      %30 = arith.addi %29, %28 : vector<64x128xi32>
      %c200_i32_15 = arith.constant 200 : i32
      %31 = vector.broadcast %c200_i32_15 : i32 to vector<64x128xi32>
      %32 = arith.cmpi slt, %30, %31 : vector<64x128xi32>
      %cst_16 = arith.constant 0.000000e+00 : f32
      %33 = vector.broadcast %cst_16 : f32 to vector<64x128xf32>
      %34 = arith.select %32, %15, %33 : vector<64x128xi1>, vector<64x128xf32>
      %c0_17 = arith.constant 0 : index
      %c0_18 = arith.constant 0 : index
      %c0_19 = arith.constant 0 : index
      %35 = vector.load %arg7[%c0_17, %c0_18, %c0_19] : memref<1x8x128xf32, #tpu.memory_space<vmem>>, vector<1x8x128xf32>
      %cst_20 = arith.constant dense<0.000000e+00> : vector<128xf32>
      %36 = vector.multi_reduction <add>, %34, %cst_20 [0] : vector<64x128xf32> to vector<128xf32>
      %37 = vector.shape_cast %36 : vector<128xf32> to vector<1x128xf32>
      %38 = vector.shape_cast %37 : vector<1x128xf32> to vector<1x1x128xf32>
      %39 = vector.broadcast %38 : vector<1x1x128xf32> to vector<1x8x128xf32>
      %40 = arith.addf %35, %39 : vector<1x8x128xf32>
      %c0_21 = arith.constant 0 : index
      %c0_22 = arith.constant 0 : index
      %c0_23 = arith.constant 0 : index
      %41 = vector.load %arg7[%c0_21, %c0_22, %c0_23] : memref<1x8x128xf32, #tpu.memory_space<vmem>>, vector<1x8x128xf32>
      tpu.vector_store %arg7[%c0_21, %c0_22, %c0_23], %40 {strides = array<i32>} : memref<1x8x128xf32, #tpu.memory_space<vmem>>, vector<1x8x128xf32>,
      %c0_24 = arith.constant 0 : index
      %c0_25 = arith.constant 0 : index
      %c0_26 = arith.constant 0 : index
      %42 = vector.load %arg8[%c0_24, %c0_25, %c0_26] : memref<1x8x128xf32, #tpu.memory_space<vmem>>, vector<1x8x128xf32>
      %43 = arith.mulf %34, %34 : vector<64x128xf32>
      %cst_27 = arith.constant dense<0.000000e+00> : vector<128xf32>
      %44 = vector.multi_reduction <add>, %43, %cst_27 [0] : vector<64x128xf32> to vector<128xf32>
      %45 = vector.shape_cast %44 : vector<128xf32> to vector<1x128xf32>
      %46 = vector.shape_cast %45 : vector<1x128xf32> to vector<1x1x128xf32>
      %47 = vector.broadcast %46 : vector<1x1x128xf32> to vector<1x8x128xf32>
      %48 = arith.addf %42, %47 : vector<1x8x128xf32>
      %c0_28 = arith.constant 0 : index
      %c0_29 = arith.constant 0 : index
      %c0_30 = arith.constant 0 : index
      %49 = vector.load %arg8[%c0_28, %c0_29, %c0_30] : memref<1x8x128xf32, #tpu.memory_space<vmem>>, vector<1x8x128xf32>
      tpu.vector_store %arg8[%c0_28, %c0_29, %c0_30], %48 {strides = array<i32>} : memref<1x8x128xf32, #tpu.memory_space<vmem>>, vector<1x8x128xf32>,
    } else {
    }
    return
  }
  func.func @transform_0(%arg0: i32, %arg1: i32) -> (i32, i32) {
    %c2_i32 = arith.constant 2 : i32
    %0 = arith.muli %arg0, %c2_i32 : i32
    %1 = arith.addi %0, %arg1 : i32
    %c0_i32 = arith.constant 0 : i32
    %c0_i32_0 = arith.constant 0 : i32
    return %1, %c0_i32 : i32, i32
  }
  func.func @transform_1(%arg0: i32, %arg1: i32) -> (i32, i32) {
    %c0_i32 = arith.constant 0 : i32
    %c0_i32_0 = arith.constant 0 : i32
    %c0_i32_1 = arith.constant 0 : i32
    return %c0_i32, %c0_i32_0 : i32, i32
  }
  func.func @transform_2(%arg0: i32, %arg1: i32) -> (i32, i32) {
    %c0_i32 = arith.constant 0 : i32
    %c0_i32_0 = arith.constant 0 : i32
    %c0_i32_1 = arith.constant 0 : i32
    return %c0_i32, %c0_i32_0 : i32, i32
  }
  func.func @transform_3(%arg0: i32, %arg1: i32) -> (i32, i32) {
    %c0_i32 = arith.constant 0 : i32
    %c0_i32_0 = arith.constant 0 : i32
    %c0_i32_1 = arith.constant 0 : i32
    return %c0_i32, %c0_i32_0 : i32, i32
  }
  func.func @transform_4(%arg0: i32, %arg1: i32) -> (i32, i32) {
    %c0_i32 = arith.constant 0 : i32
    %c0_i32_0 = arith.constant 0 : i32
    %c0_i32_1 = arith.constant 0 : i32
    return %c0_i32, %c0_i32_0 : i32, i32
  }
  func.func @transform_5(%arg0: i32, %arg1: i32) -> (i32, i32, i32) {
    %c0_i32 = arith.constant 0 : i32
    %c0_i32_0 = arith.constant 0 : i32
    %c0_i32_1 = arith.constant 0 : i32
    return %arg0, %c0_i32, %c0_i32_0 : i32, i32, i32
  }
  func.func @transform_6(%arg0: i32, %arg1: i32) -> (i32, i32, i32) {
    %c0_i32 = arith.constant 0 : i32
    %c0_i32_0 = arith.constant 0 : i32
    %c0_i32_1 = arith.constant 0 : i32
    return %arg0, %c0_i32, %c0_i32_0 : i32, i32, i32
  }
}

</mosaic_0001>

<bundles_post_ra>
// kernel: projection_forward.3
= control target key start
LH: loop header
LB: loop body
LE: loop exit
PB: predicated region body
PF: predicated region fallthrough
CT: control target
= control target key end

     0   :  { %s704_s12 = smov 0   ;;  %s706_s13 = smov 0   ;;  %s796_s0 = inlined_call_operand.vmem [shape: bf16[256,128], index: 0, kind: input, shape index: {}]   ;;  %s797_s1 = inlined_call_operand.vmem [shape: bf16[128,128], index: 1, kind: input, shape index: {}]   ;;  %s798_s2 = inlined_call_operand.vmem [shape: f32[2,8,128], index: 2, kind: output, shape index: {0}]   ;;  %s799_s3 = inlined_call_operand.vmem [shape: f32[2,8,128], index: 3, kind: output, shape index: {1}]  }
   0x1   :  { %s708_s14 = smov 0   ;;  %s710_s15 = smov 0  }
   0x2   :  { %s712_s16 = smov 0  }
   0x3 LB: > { %s23_s17 = sadd.s32 1, %s673_s14  ;;  %s26_s18 = sadd.s32 1, %s677_s15  ;;  %s681_s16 = sphi %s712_s16, %s14_s16   ;;  %s677_s15 = sphi %s710_s15, %s803_s15   ;;  %s673_s14 = sphi %s708_s14, %s802_s14   ;;  %s669_s13 = sphi %s706_s13, %s801_s13   ;;  %s665_s12 = sphi %s704_s12, %s800_s12  }
   0x4   : > { %p24_p0 = scmp.ge.s32.totalorder %s23_s17, 2  ;;  %p517_p1 = scmp.ge.s32.totalorder %s681_s16, 1 }
   0x5   : > { %p161_p2 = scmp.lt.s32.totalorder %s681_s16, 5 }
   0x6   : > { %s805_s17 = smov (%p24_p0, %s23_s17), 0  ;;  %s807_s18 = smov (!%p24_p0, %s26_s18), %s677_s15 }
   0x7   : > { %p162_p3 = pnand %p517_p1, %p161_p2  ;;  %p28_p4 = scmp.ge.s32.totalorder %s807_s18, 2 }
   0x8   : > { %p200_p5 = scmp.lt.s32.totalorder (!%p162_p3), %s669_s13, 1  ;;  %s518_s23 = sshll.u32 (!%p162_p3), %s669_s13, 1 }
   0x9   : > { %s809_s18 = smov (%p28_p4, %s807_s18), 0  ;;  %165 = sbr.rel (%p162_p3) target bundleno = 279 (0x117), region = 28 }
   0xa   : > { %s191_s24 = sadd.s32 (!%p162_p3), %s665_s12, %s518_s23  ;;  %p535_p7 = scmp.ne.s32.totalorder (!%p162_p3), %s665_s12, 0 }
   0xb   : > { %s519_s7 = sshll.u32 (!%p162_p3), %s191_s24, 3 }
   0xc   : > { %p193_p6 = scmp.lt.s32.totalorder (!%p162_p3), %s519_s7, 31 }
   0xe   : > { %v631_v0 = vld [vmem:[%s797_s1 + $0x38] sm:$0xff]   ;;  %v632_v1 = vld [vmem:[%s797_s1 + $0x30] sm:$0xff]   ;;  %s811_s13 = smov (!%p200_p5, %s669_s13), 1  ;;  %v633_v2 = vld [vmem:[%s797_s1 + $0x28] sm:$0xff]   ;;  %s813_s7 = smov (!%p193_p6, %s519_s7), 31 }
   0xf   : > { %550 = vmatprep.subr.bf16.mxu0 %v631_v0  ;;  %574 = vmatprep.subr.bf16.mxu1 %v631_v0  ;;  %s521_s25 = sshll.u32 %s811_s13, 3  ;;  %v634_v3 = vld [vmem:[%s797_s1 + $0x20] sm:$0xff]   ;;  %s520_s10 = sshll.u32 %s813_s7, 2  ;;  %v635_v4 = vld [vmem:[%s797_s1 + $0x18] sm:$0xff]   ;;  %v636_v7 = vld [vmem:[%s797_s1 + $0x10] sm:$0xff]  }
  0x10   : > { %551 = vmatpush3.bf16.msra.mxu0 %v631_v0  ;;  %582 = vmatpush3.bf16.msra.mxu1 %v631_v0  ;;  %s749_s30 = scalar_lea.vmem %s798_s2, %s521_s25  ;;  %s754_s6 = scalar_lea.vmem %s799_s3, %s521_s25  ;;  %v637_v8 = vld [vmem:[%s797_s1 + $0x8] sm:$0xff]   ;;  %v638_v9 = vld [vmem:[%s797_s1] sm:$0xff]  }
  0x11   : > { %552 = vmatprep.subr.bf16.mxu0 %v632_v1  ;;  %575 = vmatprep.subr.bf16.mxu1 %v632_v1  ;;  %s196_s21 = scalar_lea.vmem %s796_s0, %s520_s10 }
  0x12   : > { %v639_v5 = vld [vmem:[%s196_s21] sm:$0xff]   ;;  %v640_v6 = vld [vmem:[%s196_s21 + $0x10] sm:$0xff]   ;;  %v641_v10 = vld [vmem:[%s196_s21 + $0x8] sm:$0xff]  }
  0x13   : > { %566 = vmatprep.mubr.bf16.mxu0 %v639_v5  ;;  %570 = vmatprep.mubr.bf16.mxu1 %v640_v6  ;;  %v642_v11 = vld [vmem:[%s196_s21 + $0x18] sm:$0xff]  }
  0x14   : > { %553 = vmatpush3.bf16.msra.mxu0 %v632_v1  ;;  %583 = vmatpush3.bf16.msra.mxu1 %v632_v1 }
  0x15   : > { %554 = vmatprep.subr.bf16.mxu0 %v633_v2  ;;  %576 = vmatprep.subr.bf16.mxu1 %v633_v2 }
  0x18   : > { %555 = vmatpush3.bf16.msra.mxu0 %v633_v2  ;;  %584 = vmatpush3.bf16.msra.mxu1 %v633_v2 }
  0x19   : > { %556 = vmatprep.subr.bf16.mxu0 %v634_v3  ;;  %577 = vmatprep.subr.bf16.mxu1 %v634_v3 }
  0x1c   : > { %557 = vmatpush3.bf16.msra.mxu0 %v634_v3  ;;  %585 = vmatpush3.bf16.msra.mxu1 %v634_v3 }
  0x1d   : > { %558 = vmatprep.subr.bf16.mxu0 %v635_v4  ;;  %578 = vmatprep.subr.bf16.mxu1 %v635_v4 }
  0x20   : > { %559 = vmatpush3.bf16.msra.mxu0 %v635_v4  ;;  %586 = vmatpush3.bf16.msra.mxu1 %v635_v4 }
  0x21   : > { %560 = vmatprep.subr.bf16.mxu0 %v636_v7  ;;  %579 = vmatprep.subr.bf16.mxu1 %v636_v7 }
  0x24   : > { %561 = vmatpush3.bf16.msra.mxu0 %v636_v7  ;;  %587 = vmatpush3.bf16.msra.mxu1 %v636_v7 }
  0x25   : > { %562 = vmatprep.subr.bf16.mxu0 %v637_v8  ;;  %580 = vmatprep.subr.bf16.mxu1 %v637_v8 }
  0x28   : > { %563 = vmatpush3.bf16.msra.mxu0 %v637_v8  ;;  %588 = vmatpush3.bf16.msra.mxu1 %v637_v8 }
  0x29   : > { %564 = vmatprep.subr.bf16.mxu0 %v638_v9  ;;  %581 = vmatprep.subr.bf16.mxu1 %v638_v9 }
  0x2c   : > { %565 = vmatpush3.bf16.msra.mxu0 %v638_v9  ;;  %589 = vmatpush3.bf16.msra.mxu1 %v638_v9 }
  0x2f   : > { %567 = vmatmul.mubr.bf16.vlgmr.msra.gmra.mxu0 %v641_v10  ;;  %571 = vmatmul.mubr.bf16.vlgmr.msra.gmra.mxu1 %v642_v11 }
  0xef   : > { %v568_v12 = vpop.f32.mrf.mxu0  ;;  %v572_v13 = vpop.f32.mrf.mxu1 }
  0xf1   : > { %v339_v14 = vpop.f32.mrf.mxu0  ;;  %v355_v15 = vpop.f32.mrf.mxu1  ;;  %373 = sbr.rel (%p535_p7) target bundleno = 248 (0xf8), region = 32 }
  0xf3   : > { %v569_v16 = vpop.f32.mrf.mxu0  ;;  %v573_v17 = vpop.f32.mrf.mxu1 }
  0xf5   : > { %v342_v18 = vpop.f32.mrf.mxu0  ;;  %v358_v19 = vpop.f32.mrf.mxu1 }
  0xf6   : > { %v683_v20 = vmov 0.0  }
  0xf7   : > { %374 = vst [vmem:[%s749_s30] sm:$0xff] %v683_v20  ;;  %375 = vst [vmem:[%s754_s6] sm:$0xff] %v683_v20 }
  0xf8 PF: > { %v377_v21 = vadd.f32 %v342_v18, %v339_v14  ;;  %v393_v22 = vmul.f32 %v339_v14, %v339_v14  ;;  %v394_v23 = vmul.f32 %v342_v18, %v342_v18  ;;  %v395_v24 = vmul.f32 %v568_v12, %v568_v12 }
  0xf9   : > { %v396_v26 = vmul.f32 %v569_v16, %v569_v16  ;;  %v397_v29 = vmul.f32 %v355_v15, %v355_v15  ;;  %v398_v32 = vmul.f32 %v358_v19, %v358_v19  ;;  %v399_v35 = vmul.f32 %v572_v13, %v572_v13 }
  0xfa   : > { %v378_v25 = vadd.f32 %v568_v12, %v377_v21  ;;  %v401_v27 = vadd.f32 %v394_v23, %v393_v22  ;;  %v400_v38 = vmul.f32 %v573_v17, %v573_v17 }
  0xfc   : > { %v379_v28 = vadd.f32 %v569_v16, %v378_v25  ;;  %v402_v30 = vadd.f32 %v401_v27, %v395_v24 }
  0xfe   : > { %v380_v31 = vadd.f32 %v379_v28, %v355_v15  ;;  %v403_v33 = vadd.f32 %v402_v30, %v396_v26  ;;  %v376_v52 = vld [vmem:[%s749_s30] sm:$0xff] }
  0xff   : > { %v392_v55 = vld [vmem:[%s754_s6] sm:$0xff] }
 0x100   : > { %v381_v34 = vadd.f32 %v380_v31, %v358_v19  ;;  %v404_v36 = vadd.f32 %v403_v33, %v397_v29 }
 0x102   : > { %v382_v37 = vadd.f32 %v572_v13, %v381_v34  ;;  %v405_v39 = vadd.f32 %v404_v36, %v398_v32 }
 0x104   : > { %v383_v40 = vadd.f32 %v573_v17, %v382_v37  ;;  %v406_v41 = vadd.f32 %v405_v39, %v399_v35 }
 0x106   : > { %v384_v42 = vrot.slane %v383_v40, 4  ;;  %v407_v43 = vadd.f32 %v406_v41, %v400_v38 }
 0x108   : > { %v385_v44 = vadd.f32 %v384_v42, %v383_v40  ;;  %v408_v45 = vrot.slane %v407_v43, 4 }
 0x10a   : > { %v386_v46 = vrot.slane %v385_v44, 2  ;;  %v409_v47 = vadd.f32 %v408_v45, %v407_v43 }
 0x10c   : > { %v387_v48 = vadd.f32 %v386_v46, %v385_v44  ;;  %v410_v49 = vrot.slane %v409_v47, 2 }
 0x10e   : > { %v388_v50 = vrot.slane %v387_v48, 1  ;;  %v411_v51 = vadd.f32 %v410_v49, %v409_v47 }
 0x110   : > { %v389_v53 = vadd.f32 %v388_v50, %v387_v48  ;;  %v412_v54 = vrot.slane %v411_v51, 1 }
 0x112   : > { %v390_v56 = vadd.f32 %v389_v53, %v376_v52  ;;  %v413_v57 = vadd.f32 %v412_v54, %v411_v51 }
 0x114   : > { %391 = vst [vmem:[%s749_s30] sm:$0xff] %v390_v56  ;;  %v414_v58 = vadd.f32 %v413_v57, %v392_v55 }
 0x116   : > { %415 = vst [vmem:[%s754_s6] sm:$0xff] %v414_v58 }
 0x117 PF: > { %s14_s16 = sadd.s32 1, %s681_s16   ;;  %s800_s12 = smov %s673_s14 }
 0x118   : > { %p11_p8 = scmp.ge.s32.totalorder %s14_s16, 6   ;;  %s801_s13 = smov %s677_s15 }
 0x119   : > { %s802_s14 = smov %s805_s17  ;;  %s803_s15 = smov %s809_s18 }
 0x11a   :  { %13 = sbr.rel (!%p11_p8) target bundleno = 3 (0x3), region = 74 }

// kernel: projection_forward.5
= control target key start
LH: loop header
LB: loop body
LE: loop exit
PB: predicated region body
PF: predicated region fallthrough
CT: control target
= control target key end

     0   :  { %s1549_s13 = smov 0   ;;  %s1551_s14 = smov 0   ;;  %s1780_s0 = inlined_call_operand.vmem [shape: bf16[256,128], index: 0, kind: input, shape index: {}]   ;;  %s1781_s1 = inlined_call_operand.vmem [shape: bf16[128,128], index: 1, kind: input, shape index: {}]   ;;  %s1782_s2 = inlined_call_operand.vmem [shape: f32[1,128], index: 2, kind: input, shape index: {}]   ;;  %s1783_s3 = inlined_call_operand.vmem [shape: f32[1,128], index: 3, kind: input, shape index: {}]   ;;  %s1784_s4 = inlined_call_operand.vmem [shape: bf16[128,128], index: 4, kind: input, shape index: {}]   ;;  %s1785_s5 = inlined_call_operand.vmem [shape: f32[1,128], index: 5, kind: input, shape index: {}]   ;;  %s1786_s6 = inlined_call_operand.vmem [shape: f32[1,128], index: 6, kind: input, shape index: {}]   ;;  %s1787_s7 = inlined_call_operand.vmem [shape: bf16[128,128], index: 7, kind: input, shape index: {}]   ;;  %s1788_s8 = inlined_call_operand.vmem [shape: f32[256,128], index: 8, kind: output, shape index: {0}]   ;;  %s1789_s9 = inlined_call_operand.vmem [shape: f32[2,8,128], index: 9, kind: output, shape index: {1}]   ;;  %s1790_s10 = inlined_call_operand.vmem [shape: f32[2,8,128], index: 10, kind: output, shape index: {2}]  }
   0x1   :  { %s1553_s15 = smov 0   ;;  %s1555_s16 = smov 0  }
   0x2   :  { %s1557_s17 = smov 0  }
   0x3 LB: > { %s30_s18 = sadd.s32 1, %s1483_s15  ;;  %s33_s19 = sadd.s32 1, %s1487_s16  ;;  %s1491_s17 = sphi %s1557_s17, %s21_s17   ;;  %s1487_s16 = sphi %s1555_s16, %s1794_s16   ;;  %s1483_s15 = sphi %s1553_s15, %s1793_s15   ;;  %s1479_s14 = sphi %s1551_s14, %s1792_s14   ;;  %s1475_s13 = sphi %s1549_s13, %s1791_s13  }
   0x4   : > { %p31_p0 = scmp.ge.s32.totalorder %s30_s18, 2  ;;  %p1209_p1 = scmp.ge.s32.totalorder %s1491_s17, 1 }
   0x5   : > { %p342_p2 = scmp.lt.s32.totalorder %s1491_s17, 5 }
   0x6   : > { %s1796_s18 = smov (%p31_p0, %s30_s18), 0  ;;  %s1798_s19 = smov (!%p31_p0, %s33_s19), %s1487_s16 }
   0x7   : > { %p343_p3 = pnand %p1209_p1, %p342_p2  ;;  %p35_p4 = scmp.ge.s32.totalorder %s1798_s19, 2 }
   0x8   : > { %p412_p5 = scmp.lt.s32.totalorder (!%p343_p3), %s1479_s14, 1  ;;  %s1210_s24 = sshll.u32 (!%p343_p3), %s1479_s14, 1 }
   0x9   : > { %s1800_s19 = smov (%p35_p4, %s1798_s19), 0  ;;  %346 = sbr.rel (%p343_p3) target bundleno = 761 (0x2f9), region = 52 }
   0xa   : > { %s1588_s25 = sadd.s32 (!%p343_p3), %s1475_s13, %s1210_s24  ;;  %p1251_p7 = scmp.ne.s32.totalorder (!%p343_p3), %s1475_s13, 0 }
   0xb   : > { %s1211_s22 = sshll.u32 (!%p343_p3), %s1588_s25, 3 }
   0xc   : > { %p395_p6 = scmp.lt.s32.totalorder (!%p343_p3), %s1211_s22, 31 }
   0xe   : > { %v1425_v0 = vld [vmem:[%s1781_s1 + $0x38] sm:$0xff]   ;;  %v1426_v1 = vld [vmem:[%s1781_s1 + $0x30] sm:$0xff]   ;;  %s1802_s14 = smov (!%p412_p5, %s1479_s14), 1  ;;  %v1427_v2 = vld [vmem:[%s1781_s1 + $0x28] sm:$0xff]   ;;  %s1804_s22 = smov (!%p395_p6, %s1211_s22), 31 }
   0xf   : > { %1296 = vmatprep.subr.bf16.mxu0 %v1425_v0  ;;  %s1216_s26 = sshll.u32 %s1802_s14, 3  ;;  %v1428_v3 = vld [vmem:[%s1781_s1 + $0x20] sm:$0xff]   ;;  %v1437_v4 = vld [vmem:[%s1784_s4 + $0x38] sm:$0xff]   ;;  %v1438_v5 = vld [vmem:[%s1784_s4 + $0x30] sm:$0xff]   ;;  %s1212_s12 = sshll.u32 %s1804_s22, 2 }
  0x10   : > { %1297 = vmatpush3.bf16.msra.mxu0 %v1425_v0  ;;  %s1596_s11 = scalar_lea.vmem %s1789_s9, %s1216_s26  ;;  %s1601_s21 = scalar_lea.vmem %s1790_s10, %s1216_s26  ;;  %v1429_v6 = vld [vmem:[%s1781_s1 + $0x18] sm:$0xff]   ;;  %1320 = vmatprep.subr.bf16.mxu1 %v1437_v4  ;;  %v1439_v7 = vld [vmem:[%s1784_s4 + $0x28] sm:$0xff]   ;;  %v1430_v9 = vld [vmem:[%s1781_s1 + $0x10] sm:$0xff]  }
  0x11   : > { %1298 = vmatprep.subr.bf16.mxu0 %v1426_v1  ;;  %1321 = vmatpush3.bf16.msra.mxu1 %v1437_v4  ;;  %s398_s27 = scalar_lea.vmem %s1780_s0, %s1212_s12  ;;  %v1440_v10 = vld [vmem:[%s1784_s4 + $0x20] sm:$0xff]   ;;  %v1431_v11 = vld [vmem:[%s1781_s1 + $0x8] sm:$0xff]   ;;  %v1441_v16 = vld [vmem:[%s1784_s4 + $0x18] sm:$0xff]   ;;  %s1215_s29 = sshll.u32 %s1804_s22, 3 }
  0x12   : > { %1322 = vmatprep.subr.bf16.mxu1 %v1438_v5  ;;  %v1433_v8 = vld [vmem:[%s398_s27] sm:$0xff]   ;;  %v1434_v13 = vld [vmem:[%s398_s27 + $0x8] sm:$0xff]   ;;  %v1435_v14 = vld [vmem:[%s398_s27 + $0x10] sm:$0xff]   ;;  %s408_s20 = scalar_lea.vmem %s1788_s8, %s1215_s29 }
  0x13   : > { %1312 = vmatprep.mubr.bf16.mxu0 %v1433_v8  ;;  %v1432_v12 = vld [vmem:[%s1781_s1] sm:$0xff]   ;;  %v1436_v15 = vld [vmem:[%s398_s27 + $0x18] sm:$0xff]   ;;  %v1442_v17 = vld [vmem:[%s1784_s4 + $0x10] sm:$0xff]  }
  0x14   : > { %1299 = vmatpush3.bf16.msra.mxu0 %v1426_v1  ;;  %v1443_v18 = vld [vmem:[%s1784_s4 + $0x8] sm:$0xff]   ;;  %v1444_v19 = vld [vmem:[%s1784_s4] sm:$0xff]   ;;  %v1445_v20 = vld [vmem:[%s1787_s7 + $0x38] sm:$0xff]  }
  0x15   : > { %1300 = vmatprep.subr.bf16.mxu0 %v1427_v2  ;;  %1323 = vmatpush3.bf16.msra.mxu1 %v1438_v5  ;;  %v1446_v21 = vld [vmem:[%s1787_s7 + $0x30] sm:$0xff]   ;;  %v1447_v22 = vld [vmem:[%s1787_s7 + $0x28] sm:$0xff]   ;;  %v1448_v23 = vld [vmem:[%s1787_s7 + $0x20] sm:$0xff]  }
  0x16   : > { %1324 = vmatprep.subr.bf16.mxu1 %v1439_v7  ;;  %v1231_v25 = vld [vmem:[%s1782_s2] ss:$0 sm:$0xff]  ;;  %v1449_v62 = vld [vmem:[%s1787_s7 + $0x18] sm:$0xff]   ;;  %v1450_v63 = vld [vmem:[%s1787_s7 + $0x10] sm:$0xff]  }
  0x17   : > { %v1232_v30 = vld [vmem:[%s1783_s3] ss:$0 sm:$0xff]  ;;  %v1451_v0 = vld [vmem:[%s1787_s7 + $0x8] sm:$0xff]  }
  0x18   : > { %1301 = vmatpush3.bf16.msra.mxu0 %v1427_v2  ;;  %v1452_v1 = vld [vmem:[%s1787_s7] sm:$0xff]  }
  0x19   : > { %1302 = vmatprep.subr.bf16.mxu0 %v1428_v3  ;;  %1325 = vmatpush3.bf16.msra.mxu1 %v1439_v7  ;;  %v1242_v8 = vld [vmem:[%s1786_s6] ss:$0 sm:$0xff] }
  0x1a   : > { %1326 = vmatprep.subr.bf16.mxu1 %v1440_v10 }
  0x1c   : > { %1303 = vmatpush3.bf16.msra.mxu0 %v1428_v3  ;;  %v1241_v3 = vld [vmem:[%s1785_s5] ss:$0 sm:$0xff] }
  0x1d   : > { %1304 = vmatprep.subr.bf16.mxu0 %v1429_v6  ;;  %1327 = vmatpush3.bf16.msra.mxu1 %v1440_v10 }
  0x1e   : > { %1328 = vmatprep.subr.bf16.mxu1 %v1441_v16 }
  0x20   : > { %1305 = vmatpush3.bf16.msra.mxu0 %v1429_v6 }
  0x21   : > { %1306 = vmatprep.subr.bf16.mxu0 %v1430_v9  ;;  %1329 = vmatpush3.bf16.msra.mxu1 %v1441_v16 }
  0x22   : > { %1330 = vmatprep.subr.bf16.mxu1 %v1442_v17 }
  0x24   : > { %1307 = vmatpush3.bf16.msra.mxu0 %v1430_v9 }
  0x25   : > { %1308 = vmatprep.subr.bf16.mxu0 %v1431_v11  ;;  %1331 = vmatpush3.bf16.msra.mxu1 %v1442_v17 }
  0x26   : > { %1332 = vmatprep.subr.bf16.mxu1 %v1443_v18 }
  0x28   : > { %1309 = vmatpush3.bf16.msra.mxu0 %v1431_v11 }
  0x29   : > { %1310 = vmatprep.subr.bf16.mxu0 %v1432_v12  ;;  %1333 = vmatpush3.bf16.msra.mxu1 %v1443_v18 }
  0x2a   : > { %1334 = vmatprep.subr.bf16.mxu1 %v1444_v19 }
  0x2c   : > { %1311 = vmatpush3.bf16.msra.mxu0 %v1432_v12 }
  0x2d   : > { %1335 = vmatpush3.bf16.msra.mxu1 %v1444_v19  ;;  %1344 = vmatprep.subr.bf16.mxu0 %v1445_v20 }
  0x2e   : > { %1368 = vmatprep.subr.bf16.mxu1 %v1445_v20 }
  0x2f   : > { %1313 = vmatmul.mubr.bf16.vlgmr.msra.gmra.mxu0 %v1434_v13 }
  0x30   : > { %1316 = vmatprep.mubr.bf16.mxu0 %v1435_v14  ;;  %1345 = vmatpush3.bf16.msra.mxu0 %v1445_v20 }
  0x31   : > { %1346 = vmatprep.subr.bf16.mxu0 %v1446_v21 }
  0x34   : > { %1347 = vmatpush3.bf16.msra.mxu0 %v1446_v21 }
  0x35   : > { %1348 = vmatprep.subr.bf16.mxu0 %v1447_v22 }
  0x37   : > { %1317 = vmatmul.mubr.bf16.gmra.mxu0 %v1436_v15 }
  0x38   : > { %1349 = vmatpush3.bf16.msra.mxu0 %v1447_v22 }
  0x39   : > { %1350 = vmatprep.subr.bf16.mxu0 %v1448_v23 }
  0x3c   : > { %1351 = vmatpush3.bf16.msra.mxu0 %v1448_v23 }
  0x3d   : > { %1352 = vmatprep.subr.bf16.mxu0 %v1449_v62 }
  0x40   : > { %1353 = vmatpush3.bf16.msra.mxu0 %v1449_v62 }
  0x41   : > { %1354 = vmatprep.subr.bf16.mxu0 %v1450_v63 }
  0x44   : > { %1355 = vmatpush3.bf16.msra.mxu0 %v1450_v63 }
  0x45   : > { %1356 = vmatprep.subr.bf16.mxu0 %v1451_v0 }
  0x48   : > { %1357 = vmatpush3.bf16.msra.mxu0 %v1451_v0 }
  0x49   : > { %1358 = vmatprep.subr.bf16.mxu0 %v1452_v1 }
  0x4c   : > { %1359 = vmatpush3.bf16.msra.mxu0 %v1452_v1 }
  0xef   : > { %v1314_v24 = vpop.f32.mrf.mxu0 }
  0xf0   : > { %v593_v28 = vmul.f32 %v1314_v24, %v1231_v25 }
  0xf1   : > { %v553_v26 = vpop.f32.mrf.mxu0 }
  0xf2   : > { %v591_v27 = vmul.f32 %v1231_v25, %v553_v26  ;;  %v608_v36 = vadd.f32 %v1232_v30, %v593_v28 }
  0xf3   : > { %v1315_v29 = vpop.f32.mrf.mxu0 }
  0xf4   : > { %v594_v31 = vmul.f32 %v1315_v29, %v1231_v25  ;;  %v606_v35 = vadd.f32 %v1232_v30, %v591_v27  ;;  %v616_v44 = vmax.f32 %v608_v36, 0.0 }
  0xf5   : > { %v556_v32 = vpop.f32.mrf.mxu0 }
  0xf6   : > { %v609_v33 = vadd.f32 %v1232_v30, %v594_v31  ;;  %v592_v34 = vmul.f32 %v1231_v25, %v556_v32  ;;  %v614_v42 = vmax.f32 %v606_v35, 0.0 }
  0xf7   : > { %v1318_v37 = vpop.f32.mrf.mxu0 }
  0xf8   : > { %v607_v38 = vadd.f32 %v1232_v30, %v592_v34  ;;  %v617_v39 = vmax.f32 %v609_v33, 0.0  ;;  %v597_v45 = vmul.f32 %v1318_v37, %v1231_v25 }
  0xf9   : > { %v569_v40 = vpop.f32.mrf.mxu0 }
  0xfa   : > { %v595_v41 = vmul.f32 %v1231_v25, %v569_v40  ;;  %v615_v43 = vmax.f32 %v607_v38, 0.0  ;;  %v623_v50 = vpack.c.bf16 %v617_v39, %v616_v44  ;;  %v612_v54 = vadd.f32 %v1232_v30, %v597_v45 }
  0xfb   : > { %v1319_v46 = vpop.f32.mrf.mxu0 }
  0xfc   : > { %v598_v47 = vmul.f32 %v1319_v46, %v1231_v25  ;;  %v622_v48 = vpack.c.bf16 %v615_v43, %v614_v42  ;;  %v610_v51 = vadd.f32 %v1232_v30, %v595_v41  ;;  %v620_v59 = vmax.f32 %v612_v54, 0.0 }
  0xfd   : > { %v572_v49 = vpop.f32.mrf.mxu0 }
  0xfe   : > { %v613_v52 = vadd.f32 %v1232_v30, %v598_v47  ;;  %v596_v53 = vmul.f32 %v1231_v25, %v572_v49  ;;  %1336 = vmatprep.mubr.bf16.mxu1 %v622_v48  ;;  %v618_v57 = vmax.f32 %v610_v51, 0.0 }
  0xff   : > { %1337 = vmatmul.mubr.bf16.vlgmr.msra.gmra.mxu1 %v623_v50 }
 0x100   : > { %v611_v55 = vadd.f32 %v1232_v30, %v596_v53  ;;  %1376 = vmatpush3.bf16.msra.mxu1 %v1445_v20  ;;  %v621_v56 = vmax.f32 %v613_v52, 0.0 }
 0x101   : > { %1369 = vmatprep.subr.bf16.mxu1 %v1446_v21 }
 0x102   : > { %v619_v58 = vmax.f32 %v611_v55, 0.0  ;;  %v625_v61 = vpack.c.bf16 %v621_v56, %v620_v59 }
 0x104   : > { %v624_v60 = vpack.c.bf16 %v619_v58, %v618_v57  ;;  %1377 = vmatpush3.bf16.msra.mxu1 %v1446_v21 }
 0x105   : > { %1370 = vmatprep.subr.bf16.mxu1 %v1447_v22 }
 0x106   : > { %1340 = vmatprep.mubr.bf16.mxu1 %v624_v60 }
 0x107   : > { %1341 = vmatmul.mubr.bf16.gmra.mxu1 %v625_v61 }
 0x108   : > { %1378 = vmatpush3.bf16.msra.mxu1 %v1447_v22 }
 0x109   : > { %1371 = vmatprep.subr.bf16.mxu1 %v1448_v23 }
 0x10c   : > { %1379 = vmatpush3.bf16.msra.mxu1 %v1448_v23 }
 0x10d   : > { %1372 = vmatprep.subr.bf16.mxu1 %v1449_v62 }
 0x110   : > { %1380 = vmatpush3.bf16.msra.mxu1 %v1449_v62 }
 0x111   : > { %1373 = vmatprep.subr.bf16.mxu1 %v1450_v63 }
 0x114   : > { %1381 = vmatpush3.bf16.msra.mxu1 %v1450_v63 }
 0x115   : > { %1374 = vmatprep.subr.bf16.mxu1 %v1451_v0 }
 0x118   : > { %1382 = vmatpush3.bf16.msra.mxu1 %v1451_v0 }
 0x119   : > { %1375 = vmatprep.subr.bf16.mxu1 %v1452_v1 }
 0x11c   : > { %1383 = vmatpush3.bf16.msra.mxu1 %v1452_v1 }
 0x1bf   : > { %v1338_v2 = vpop.f32.mrf.mxu1 }
 0x1c0   : > { %v764_v6 = vmul.f32 %v1338_v2, %v1241_v3 }
 0x1c1   : > { %v724_v4 = vpop.f32.mrf.mxu1 }
 0x1c2   : > { %v762_v5 = vmul.f32 %v1241_v3, %v724_v4  ;;  %v779_v14 = vadd.f32 %v1242_v8, %v764_v6 }
 0x1c3   : > { %v1339_v7 = vpop.f32.mrf.mxu1 }
 0x1c4   : > { %v765_v9 = vmul.f32 %v1339_v7, %v1241_v3  ;;  %v777_v11 = vadd.f32 %v1242_v8, %v762_v5  ;;  %v787_v22 = vmax.f32 %v779_v14, 0.0 }
 0x1c5   : > { %v727_v10 = vpop.f32.mrf.mxu1 }
 0x1c6   : > { %v780_v12 = vadd.f32 %v1242_v8, %v765_v9  ;;  %v763_v13 = vmul.f32 %v1241_v3, %v727_v10  ;;  %v785_v19 = vmax.f32 %v777_v11, 0.0 }
 0x1c7   : > { %v1342_v15 = vpop.f32.mrf.mxu1 }
 0x1c8   : > { %v778_v16 = vadd.f32 %v1242_v8, %v763_v13  ;;  %v788_v17 = vmax.f32 %v780_v12, 0.0  ;;  %v768_v23 = vmul.f32 %v1342_v15, %v1241_v3 }
 0x1c9   : > { %v740_v18 = vpop.f32.mrf.mxu1 }
 0x1ca   : > { %v786_v20 = vmax.f32 %v778_v16, 0.0  ;;  %v766_v21 = vmul.f32 %v1241_v3, %v740_v18  ;;  %v794_v27 = vpack.c.bf16 %v788_v17, %v787_v22  ;;  %v783_v32 = vadd.f32 %v1242_v8, %v768_v23 }
 0x1cb   : > { %v1343_v24 = vpop.f32.mrf.mxu1 }
 0x1cc   : > { %v769_v25 = vmul.f32 %v1343_v24, %v1241_v3  ;;  %v793_v26 = vpack.c.bf16 %v786_v20, %v785_v19  ;;  %v781_v29 = vadd.f32 %v1242_v8, %v766_v21  ;;  %v791_v37 = vmax.f32 %v783_v32, 0.0 }
 0x1cd   : > { %v743_v28 = vpop.f32.mrf.mxu1 }
 0x1ce   : > { %v784_v30 = vadd.f32 %v1242_v8, %v769_v25  ;;  %v767_v31 = vmul.f32 %v1241_v3, %v743_v28  ;;  %1360 = vmatprep.mubr.bf16.mxu0 %v793_v26  ;;  %v789_v35 = vmax.f32 %v781_v29, 0.0 }
 0x1cf   : > { %1361 = vmatmul.mubr.bf16.vlgmr.msra.gmra.mxu0 %v794_v27 }
 0x1d0   : > { %v782_v33 = vadd.f32 %v1242_v8, %v767_v31  ;;  %v792_v34 = vmax.f32 %v784_v30, 0.0 }
 0x1d2   : > { %v790_v36 = vmax.f32 %v782_v33, 0.0  ;;  %v796_v39 = vpack.c.bf16 %v792_v34, %v791_v37 }
 0x1d4   : > { %v795_v38 = vpack.c.bf16 %v790_v36, %v789_v35 }
 0x1d6   : > { %1364 = vmatprep.mubr.bf16.mxu1 %v795_v38 }
 0x1d7   : > { %1365 = vmatmul.mubr.bf16.vlgmr.msra.gmra.mxu1 %v796_v39 }
 0x28f   : > { %v1689_v40 = vpop.f32.mrf.mxu0 }
 0x290   : > { %928 = vst [vmem:[%s408_s20 + $0x10] sm:$0xff] %v1689_v40 }
 0x291   : > { %v1692_v41 = vpop.f32.mrf.mxu0 }
 0x292   : > { %926 = vst [vmem:[%s408_s20] sm:$0xff] %v1692_v41 }
 0x293   : > { %v1695_v42 = vpop.f32.mrf.mxu0 }
 0x294   : > { %929 = vst [vmem:[%s408_s20 + $0x18] sm:$0xff] %v1695_v42 }
 0x295   : > { %v1698_v43 = vpop.f32.mrf.mxu0 }
 0x296   : > { %927 = vst [vmem:[%s408_s20 + $0x8] sm:$0xff] %v1698_v43 }
 0x297   : > { %v1701_v44 = vpop.f32.mrf.mxu1 }
 0x298   : > { %932 = vst [vmem:[%s408_s20 + $0x30] sm:$0xff] %v1701_v44 }
 0x299   : > { %v1704_v45 = vpop.f32.mrf.mxu1 }
 0x29a   : > { %930 = vst [vmem:[%s408_s20 + $0x20] sm:$0xff] %v1704_v45  ;;  %937 = sbr.rel (%p1251_p7) target bundleno = 673 (0x2a1), region = 56 }
 0x29b   : > { %v1707_v46 = vpop.f32.mrf.mxu1 }
 0x29c   : > { %933 = vst [vmem:[%s408_s20 + $0x38] sm:$0xff] %v1707_v46 }
 0x29d   : > { %v1710_v47 = vpop.f32.mrf.mxu1 }
 0x29e   : > { %931 = vst [vmem:[%s408_s20 + $0x28] sm:$0xff] %v1710_v47 }
 0x29f   : > { %v1493_v48 = vmov 0.0  }
 0x2a0   : > { %938 = vst [vmem:[%s1596_s11] sm:$0xff] %v1493_v48  ;;  %939 = vst [vmem:[%s1601_s21] sm:$0xff] %v1493_v48 }
 0x2a1 PF: > { %s1258_s22 = sshll.u32 %s1588_s25, 6 }
 0x2a2   : > { %s1719_s27 = sadd.s32 64, %s1258_s22 }
 0x2a3   : > { %p1253_p8 = scmp.gt.s32.totalorder %s1719_s27, 200 }
 0x2a5   : > { %945 = sbr.rel (%p1253_p8) target bundleno = 713 (0x2c9), region = 60 }
 0x2aa   : > { %v947_v49 = vadd.f32 %v1698_v43, %v1692_v41  ;;  %v963_v50 = vmul.f32 %v1692_v41, %v1692_v41  ;;  %v964_v51 = vmul.f32 %v1698_v43, %v1698_v43  ;;  %v965_v52 = vmul.f32 %v1689_v40, %v1689_v40  ;;  %v946_v16 = vld [vmem:[%s1596_s11] sm:$0xff] }
 0x2ab   : > { %v966_v54 = vmul.f32 %v1695_v42, %v1695_v42  ;;  %v967_v57 = vmul.f32 %v1704_v45, %v1704_v45  ;;  %v968_v60 = vmul.f32 %v1710_v47, %v1710_v47  ;;  %v969_v63 = vmul.f32 %v1701_v44, %v1701_v44  ;;  %v962_v19 = vld [vmem:[%s1601_s21] sm:$0xff] }
 0x2ac   : > { %v948_v53 = vadd.f32 %v1689_v40, %v947_v49  ;;  %v971_v55 = vadd.f32 %v964_v51, %v963_v50  ;;  %v970_v2 = vmul.f32 %v1707_v46, %v1707_v46 }
 0x2ae   : > { %v949_v56 = vadd.f32 %v1695_v42, %v948_v53  ;;  %v972_v58 = vadd.f32 %v971_v55, %v965_v52 }
 0x2b0   : > { %v950_v59 = vadd.f32 %v949_v56, %v1704_v45  ;;  %v973_v61 = vadd.f32 %v972_v58, %v966_v54 }
 0x2b2   : > { %v951_v62 = vadd.f32 %v950_v59, %v1710_v47  ;;  %v974_v0 = vadd.f32 %v973_v61, %v967_v57 }
 0x2b4   : > { %v952_v1 = vadd.f32 %v1701_v44, %v951_v62  ;;  %v975_v3 = vadd.f32 %v974_v0, %v968_v60 }
 0x2b6   : > { %v953_v4 = vadd.f32 %v1707_v46, %v952_v1  ;;  %v976_v5 = vadd.f32 %v975_v3, %v969_v63 }
 0x2b8   : > { %v954_v6 = vrot.slane %v953_v4, 4  ;;  %v977_v7 = vadd.f32 %v976_v5, %v970_v2 }
 0x2ba   : > { %v955_v8 = vadd.f32 %v954_v6, %v953_v4  ;;  %v978_v9 = vrot.slane %v977_v7, 4 }
 0x2bc   : > { %v956_v10 = vrot.slane %v955_v8, 2  ;;  %v979_v11 = vadd.f32 %v978_v9, %v977_v7 }
 0x2be   : > { %v957_v12 = vadd.f32 %v956_v10, %v955_v8  ;;  %v980_v13 = vrot.slane %v979_v11, 2 }
 0x2c0   : > { %v958_v14 = vrot.slane %v957_v12, 1  ;;  %v981_v15 = vadd.f32 %v980_v13, %v979_v11 }
 0x2c2   : > { %v959_v17 = vadd.f32 %v958_v14, %v957_v12  ;;  %v982_v18 = vrot.slane %v981_v15, 1 }
 0x2c4   : > { %v960_v20 = vadd.f32 %v959_v17, %v946_v16  ;;  %v983_v21 = vadd.f32 %v982_v18, %v981_v15 }
 0x2c6   : > { %961 = vst [vmem:[%s1596_s11] sm:$0xff] %v960_v20  ;;  %v984_v22 = vadd.f32 %v983_v21, %v962_v19 }
 0x2c8   : > { %985 = vst [vmem:[%s1601_s21] sm:$0xff] %v984_v22 }
 0x2c9 PF: > { %p1254_p9 = scmp.le.s32.totalorder %s1719_s27, 200 }
 0x2cb   : > { %989 = sbr.rel (%p1254_p9) target bundleno = 761 (0x2f9), region = 64 }
 0x2d0   : > { %v991_v23 = vlaneseq  ;;  %v1000_v25 = vstv %s1258_s22  ;;  %v1025_v15 = vld [vmem:[%s1596_s11] sm:$0xff] }
 0x2d1   : > { %v1041_v20 = vld [vmem:[%s1601_s21] sm:$0xff] }
 0x2d2   : > { %v992_v24 = vshrl.u32 %v991_v23, 7 }
 0x2d4   : > { %v993_v26 = vadd.s32 8, %v992_v24  ;;  %v994_v27 = vadd.s32 16, %v992_v24  ;;  %v995_v28 = vadd.s32 24, %v992_v24  ;;  %v996_v29 = vadd.s32 32, %v992_v24 }
 0x2d5   : > { %v997_v30 = vadd.s32 40, %v992_v24  ;;  %v998_v31 = vadd.s32 48, %v992_v24  ;;  %v1001_v32 = vadd.s32 %v1000_v25, %v992_v24  ;;  %v999_v37 = vadd.s32 56, %v992_v24 }
 0x2d6   : > { %v1002_v33 = vadd.s32 %v1000_v25, %v993_v26  ;;  %v1003_v34 = vadd.s32 %v1000_v25, %v994_v27  ;;  %v1004_v35 = vadd.s32 %v1000_v25, %v995_v28  ;;  %v1005_v36 = vadd.s32 %v1000_v25, %v996_v29 }
 0x2d7   : > { %vm1009_vm0 = vcmp.lt.s32.totalorder %v1001_v32, 200  ;;  %v1006_v38 = vadd.s32 %v1000_v25, %v997_v30  ;;  %v1007_v48 = vadd.s32 %v1000_v25, %v998_v31  ;;  %v1008_v51 = vadd.s32 %v1000_v25, %v999_v37 }
 0x2d8   : > { %vm1010_vm1 = vcmp.lt.s32.totalorder %v1002_v33, 200  ;;  %vm1011_vm2 = vcmp.lt.s32.totalorder %v1003_v34, 200  ;;  %vm1012_vm3 = vcmp.lt.s32.totalorder %v1004_v35, 200  ;;  %v1017_v39 = vsel %vm1009_vm0, %v1692_v41, 0.0 }
 0x2d9   : > { %vm1013_vm4 = vcmp.lt.s32.totalorder %v1005_v36, 200  ;;  %v1018_v49 = vsel %vm1010_vm1, %v1698_v43, 0.0  ;;  %v1019_v50 = vsel %vm1011_vm2, %v1689_v40, 0.0  ;;  %v1020_v52 = vsel %vm1012_vm3, %v1695_v42, 0.0 }
 0x2da   : > { %v1026_v53 = vadd.f32 %v1018_v49, %v1017_v39  ;;  %vm1014_vm5 = vcmp.lt.s32.totalorder %v1006_v38, 200  ;;  %v1042_v54 = vmul.f32 %v1017_v39, %v1017_v39  ;;  %v1043_v55 = vmul.f32 %v1018_v49, %v1018_v49 }
 0x2db   : > { %v1044_v56 = vmul.f32 %v1019_v50, %v1019_v50  ;;  %v1021_v57 = vsel %vm1013_vm4, %v1704_v45, 0.0  ;;  %vm1015_vm6 = vcmp.lt.s32.totalorder %v1007_v48, 200  ;;  %v1045_v59 = vmul.f32 %v1020_v52, %v1020_v52 }
 0x2dc   : > { %v1027_v58 = vadd.f32 %v1026_v53, %v1019_v50  ;;  %v1050_v41 = vadd.f32 %v1043_v55, %v1042_v54  ;;  %v1022_v60 = vsel %vm1014_vm5, %v1710_v47, 0.0  ;;  %vm1016_vm7 = vcmp.lt.s32.totalorder %v1008_v51, 200 }
 0x2dd   : > { %v1046_v43 = vmul.f32 %v1021_v57, %v1021_v57  ;;  %v1023_v62 = vsel %vm1015_vm6, %v1701_v44, 0.0  ;;  %v1047_v63 = vmul.f32 %v1022_v60, %v1022_v60  ;;  %v1024_v1 = vsel %vm1016_vm7, %v1707_v46, 0.0 }
 0x2de   : > { %v1028_v61 = vadd.f32 %v1027_v58, %v1020_v52  ;;  %v1051_v40 = vadd.f32 %v1050_v41, %v1044_v56  ;;  %v1048_v3 = vmul.f32 %v1023_v62, %v1023_v62  ;;  %v1049_v5 = vmul.f32 %v1024_v1, %v1024_v1 }
 0x2e0   : > { %v1029_v42 = vadd.f32 %v1028_v61, %v1021_v57  ;;  %v1052_v0 = vadd.f32 %v1051_v40, %v1045_v59 }
 0x2e2   : > { %v1030_v2 = vadd.f32 %v1029_v42, %v1022_v60  ;;  %v1053_v45 = vadd.f32 %v1052_v0, %v1046_v43 }
 0x2e4   : > { %v1031_v4 = vadd.f32 %v1030_v2, %v1023_v62  ;;  %v1054_v6 = vadd.f32 %v1053_v45, %v1047_v63 }
 0x2e6   : > { %v1032_v7 = vadd.f32 %v1031_v4, %v1024_v1  ;;  %v1055_v47 = vadd.f32 %v1054_v6, %v1048_v3 }
 0x2e8   : > { %v1033_v8 = vrot.slane %v1032_v7, 4  ;;  %v1056_v9 = vadd.f32 %v1055_v47, %v1049_v5 }
 0x2ea   : > { %v1034_v10 = vadd.f32 %v1033_v8, %v1032_v7  ;;  %v1057_v44 = vrot.slane %v1056_v9, 4 }
 0x2ec   : > { %v1035_v11 = vrot.slane %v1034_v10, 2  ;;  %v1058_v12 = vadd.f32 %v1057_v44, %v1056_v9 }
 0x2ee   : > { %v1036_v13 = vadd.f32 %v1035_v11, %v1034_v10  ;;  %v1059_v46 = vrot.slane %v1058_v12, 2 }
 0x2f0   : > { %v1037_v14 = vrot.slane %v1036_v13, 1  ;;  %v1060_v16 = vadd.f32 %v1059_v46, %v1058_v12 }
 0x2f2   : > { %v1038_v17 = vadd.f32 %v1037_v14, %v1036_v13  ;;  %v1061_v18 = vrot.slane %v1060_v16, 1 }
 0x2f4   : > { %v1039_v19 = vadd.f32 %v1038_v17, %v1025_v15  ;;  %v1062_v21 = vadd.f32 %v1061_v18, %v1060_v16 }
 0x2f6   : > { %1040 = vst [vmem:[%s1596_s11] sm:$0xff] %v1039_v19  ;;  %v1063_v22 = vadd.f32 %v1062_v21, %v1041_v20 }
 0x2f8   : > { %1064 = vst [vmem:[%s1601_s21] sm:$0xff] %v1063_v22 }
 0x2f9 PF: > { %s21_s17 = sadd.s32 1, %s1491_s17   ;;  %s1791_s13 = smov %s1483_s15 }
 0x2fa   : > { %p18_p10 = scmp.ge.s32.totalorder %s21_s17, 6   ;;  %s1792_s14 = smov %s1487_s16 }
 0x2fb   : > { %s1793_s15 = smov %s1796_s18  ;;  %s1794_s16 = smov %s1800_s19 }
 0x2fc   :  { %20 = sbr.rel (!%p18_p10) target bundleno = 3 (0x3), region = 118 }

// kernel: projection_forward.4
= control target key start
LH: loop header
LB: loop body
LE: loop exit
PB: predicated region body
PF: predicated region fallthrough
CT: control target
= control target key end

     0   :  { %s1103_s21 = smov 0   ;;  %s1105_s22 = smov 0   ;;  %s1289_s0 = inlined_call_operand.vmem [shape: bf16[256,128], index: 0, kind: input, shape index: {}]   ;;  %s1290_s1 = inlined_call_operand.vmem [shape: bf16[128,128], index: 1, kind: input, shape index: {}]   ;;  %s1291_s2 = inlined_call_operand.vmem [shape: f32[1,128], index: 2, kind: input, shape index: {}]   ;;  %s1292_s3 = inlined_call_operand.vmem [shape: f32[1,128], index: 3, kind: input, shape index: {}]   ;;  %s1293_s4 = inlined_call_operand.vmem [shape: bf16[128,128], index: 4, kind: input, shape index: {}]   ;;  %s1294_s5 = inlined_call_operand.vmem [shape: f32[2,8,128], index: 5, kind: output, shape index: {0}]   ;;  %s1295_s6 = inlined_call_operand.vmem [shape: f32[2,8,128], index: 6, kind: output, shape index: {1}]  }
   0x1   :  { %s1107_s23 = smov 0   ;;  %s1109_s24 = smov 0  }
   0x2   :  { %s1111_s25 = smov 0  }
   0x3 LB: > { %s26_s26 = sadd.s32 1, %s1057_s23  ;;  %s29_s27 = sadd.s32 1, %s1061_s24  ;;  %s1065_s25 = sphi %s1111_s25, %s17_s25   ;;  %s1061_s24 = sphi %s1109_s24, %s1299_s24   ;;  %s1057_s23 = sphi %s1107_s23, %s1298_s23   ;;  %s1053_s22 = sphi %s1105_s22, %s1297_s22   ;;  %s1049_s21 = sphi %s1103_s21, %s1296_s21  }
   0x4   : > { %p27_p0 = scmp.ge.s32.totalorder %s26_s26, 2  ;;  %p856_p1 = scmp.ge.s32.totalorder %s1065_s25, 1 }
   0x5   : > { %p236_p2 = scmp.lt.s32.totalorder %s1065_s25, 5 }
   0x6   : > { %s1301_s26 = smov (%p27_p0, %s26_s26), 0  ;;  %s1303_s27 = smov (!%p27_p0, %s29_s27), %s1061_s24 }
   0x7   : > { %p237_p3 = pnand %p856_p1, %p236_p2  ;;  %p31_p4 = scmp.ge.s32.totalorder %s1303_s27, 2 }
   0x8   : > { %p281_p5 = scmp.lt.s32.totalorder (!%p237_p3), %s1053_s22, 1  ;;  %s857_s8 = sshll.u32 (!%p237_p3), %s1053_s22, 1 }
   0x9   : > { %s1305_s27 = smov (%p31_p4, %s1303_s27), 0  ;;  %240 = sbr.rel (%p237_p3) target bundleno = 552 (0x228), region = 40 }
   0xa   : > { %s1142_s9 = sadd.s32 (!%p237_p3), %s1049_s21, %s857_s8  ;;  %p885_p7 = scmp.ne.s32.totalorder (!%p237_p3), %s1049_s21, 0 }
   0xb   : > { %s858_s19 = sshll.u32 (!%p237_p3), %s1142_s9, 3 }
   0xc   : > { %p274_p6 = scmp.lt.s32.totalorder (!%p237_p3), %s858_s19, 31 }
   0xe   : > { %v1007_v0 = vld [vmem:[%s1290_s1 + $0x38] sm:$0xff]   ;;  %v1008_v1 = vld [vmem:[%s1290_s1 + $0x30] sm:$0xff]   ;;  %s1307_s22 = smov (!%p281_p5, %s1053_s22), 1  ;;  %v1009_v2 = vld [vmem:[%s1290_s1 + $0x28] sm:$0xff]   ;;  %s1309_s19 = smov (!%p274_p6, %s858_s19), 31 }
   0xf   : > { %918 = vmatprep.subr.bf16.mxu0 %v1007_v0  ;;  %s860_s10 = sshll.u32 %s1307_s22, 3  ;;  %v1010_v3 = vld [vmem:[%s1290_s1 + $0x20] sm:$0xff]   ;;  %v1019_v4 = vld [vmem:[%s1293_s4 + $0x38] sm:$0xff]   ;;  %v1020_v5 = vld [vmem:[%s1293_s4 + $0x30] sm:$0xff]   ;;  %s859_s11 = sshll.u32 %s1309_s19, 2 }
  0x10   : > { %919 = vmatpush3.bf16.msra.mxu0 %v1007_v0  ;;  %s1150_s15 = scalar_lea.vmem %s1294_s5, %s860_s10  ;;  %s1155_s18 = scalar_lea.vmem %s1295_s6, %s860_s10  ;;  %v1011_v6 = vld [vmem:[%s1290_s1 + $0x18] sm:$0xff]   ;;  %942 = vmatprep.subr.bf16.mxu1 %v1019_v4  ;;  %v1021_v7 = vld [vmem:[%s1293_s4 + $0x28] sm:$0xff]   ;;  %v1012_v9 = vld [vmem:[%s1290_s1 + $0x10] sm:$0xff]  }
  0x11   : > { %920 = vmatprep.subr.bf16.mxu0 %v1008_v1  ;;  %943 = vmatpush3.bf16.msra.mxu1 %v1019_v4  ;;  %s277_s17 = scalar_lea.vmem %s1289_s0, %s859_s11  ;;  %v1022_v10 = vld [vmem:[%s1293_s4 + $0x20] sm:$0xff]   ;;  %v1013_v11 = vld [vmem:[%s1290_s1 + $0x8] sm:$0xff]   ;;  %v1023_v16 = vld [vmem:[%s1293_s4 + $0x18] sm:$0xff]  }
  0x12   : > { %944 = vmatprep.subr.bf16.mxu1 %v1020_v5  ;;  %v1015_v8 = vld [vmem:[%s277_s17] sm:$0xff]   ;;  %v1016_v13 = vld [vmem:[%s277_s17 + $0x8] sm:$0xff]   ;;  %v1017_v14 = vld [vmem:[%s277_s17 + $0x10] sm:$0xff]  }
  0x13   : > { %934 = vmatprep.mubr.bf16.mxu0 %v1015_v8  ;;  %v1014_v12 = vld [vmem:[%s1290_s1] sm:$0xff]   ;;  %v1018_v15 = vld [vmem:[%s277_s17 + $0x18] sm:$0xff]   ;;  %v1024_v17 = vld [vmem:[%s1293_s4 + $0x10] sm:$0xff]  }
  0x14   : > { %921 = vmatpush3.bf16.msra.mxu0 %v1008_v1  ;;  %v1025_v18 = vld [vmem:[%s1293_s4 + $0x8] sm:$0xff]   ;;  %v1026_v19 = vld [vmem:[%s1293_s4] sm:$0xff]  }
  0x15   : > { %922 = vmatprep.subr.bf16.mxu0 %v1009_v2  ;;  %945 = vmatpush3.bf16.msra.mxu1 %v1020_v5  ;;  %v875_v21 = vld [vmem:[%s1291_s2] ss:$0 sm:$0xff] }
  0x16   : > { %946 = vmatprep.subr.bf16.mxu1 %v1021_v7  ;;  %v876_v26 = vld [vmem:[%s1292_s3] ss:$0 sm:$0xff] }
  0x18   : > { %923 = vmatpush3.bf16.msra.mxu0 %v1009_v2 }
  0x19   : > { %924 = vmatprep.subr.bf16.mxu0 %v1010_v3  ;;  %947 = vmatpush3.bf16.msra.mxu1 %v1021_v7 }
  0x1a   : > { %948 = vmatprep.subr.bf16.mxu1 %v1022_v10 }
  0x1c   : > { %925 = vmatpush3.bf16.msra.mxu0 %v1010_v3 }
  0x1d   : > { %926 = vmatprep.subr.bf16.mxu0 %v1011_v6  ;;  %949 = vmatpush3.bf16.msra.mxu1 %v1022_v10 }
  0x1e   : > { %950 = vmatprep.subr.bf16.mxu1 %v1023_v16 }
  0x20   : > { %927 = vmatpush3.bf16.msra.mxu0 %v1011_v6 }
  0x21   : > { %928 = vmatprep.subr.bf16.mxu0 %v1012_v9  ;;  %951 = vmatpush3.bf16.msra.mxu1 %v1023_v16 }
  0x22   : > { %952 = vmatprep.subr.bf16.mxu1 %v1024_v17 }
  0x24   : > { %929 = vmatpush3.bf16.msra.mxu0 %v1012_v9 }
  0x25   : > { %930 = vmatprep.subr.bf16.mxu0 %v1013_v11  ;;  %953 = vmatpush3.bf16.msra.mxu1 %v1024_v17 }
  0x26   : > { %954 = vmatprep.subr.bf16.mxu1 %v1025_v18 }
  0x28   : > { %931 = vmatpush3.bf16.msra.mxu0 %v1013_v11 }
  0x29   : > { %932 = vmatprep.subr.bf16.mxu0 %v1014_v12  ;;  %955 = vmatpush3.bf16.msra.mxu1 %v1025_v18 }
  0x2a   : > { %956 = vmatprep.subr.bf16.mxu1 %v1026_v19 }
  0x2c   : > { %933 = vmatpush3.bf16.msra.mxu0 %v1014_v12 }
  0x2d   : > { %957 = vmatpush3.bf16.msra.mxu1 %v1026_v19 }
  0x2f   : > { %935 = vmatmul.mubr.bf16.vlgmr.msra.gmra.mxu0 %v1016_v13 }
  0x30   : > { %938 = vmatprep.mubr.bf16.mxu0 %v1017_v14 }
  0x37   : > { %939 = vmatmul.mubr.bf16.gmra.mxu0 %v1018_v15 }
  0xef   : > { %v936_v20 = vpop.f32.mrf.mxu0 }
  0xf0   : > { %v462_v24 = vmul.f32 %v936_v20, %v875_v21 }
  0xf1   : > { %v422_v22 = vpop.f32.mrf.mxu0 }
  0xf2   : > { %v460_v23 = vmul.f32 %v875_v21, %v422_v22  ;;  %v477_v32 = vadd.f32 %v876_v26, %v462_v24 }
  0xf3   : > { %v937_v25 = vpop.f32.mrf.mxu0 }
  0xf4   : > { %v463_v27 = vmul.f32 %v937_v25, %v875_v21  ;;  %v475_v31 = vadd.f32 %v876_v26, %v460_v23  ;;  %v485_v40 = vmax.f32 %v477_v32, 0.0 }
  0xf5   : > { %v425_v28 = vpop.f32.mrf.mxu0 }
  0xf6   : > { %v478_v29 = vadd.f32 %v876_v26, %v463_v27  ;;  %v461_v30 = vmul.f32 %v875_v21, %v425_v28  ;;  %v483_v38 = vmax.f32 %v475_v31, 0.0 }
  0xf7   : > { %v940_v33 = vpop.f32.mrf.mxu0 }
  0xf8   : > { %v476_v34 = vadd.f32 %v876_v26, %v461_v30  ;;  %v486_v35 = vmax.f32 %v478_v29, 0.0  ;;  %v466_v41 = vmul.f32 %v940_v33, %v875_v21 }
  0xf9   : > { %v438_v36 = vpop.f32.mrf.mxu0 }
  0xfa   : > { %v464_v37 = vmul.f32 %v875_v21, %v438_v36  ;;  %v484_v39 = vmax.f32 %v476_v34, 0.0  ;;  %v492_v46 = vpack.c.bf16 %v486_v35, %v485_v40  ;;  %v481_v50 = vadd.f32 %v876_v26, %v466_v41 }
  0xfb   : > { %v941_v42 = vpop.f32.mrf.mxu0 }
  0xfc   : > { %v467_v43 = vmul.f32 %v941_v42, %v875_v21  ;;  %v491_v44 = vpack.c.bf16 %v484_v39, %v483_v38  ;;  %v479_v47 = vadd.f32 %v876_v26, %v464_v37  ;;  %v489_v55 = vmax.f32 %v481_v50, 0.0 }
  0xfd   : > { %v441_v45 = vpop.f32.mrf.mxu0 }
  0xfe   : > { %v482_v48 = vadd.f32 %v876_v26, %v467_v43  ;;  %v465_v49 = vmul.f32 %v875_v21, %v441_v45  ;;  %958 = vmatprep.mubr.bf16.mxu1 %v491_v44  ;;  %v487_v53 = vmax.f32 %v479_v47, 0.0 }
  0xff   : > { %959 = vmatmul.mubr.bf16.vlgmr.msra.gmra.mxu1 %v492_v46 }
 0x100   : > { %v480_v51 = vadd.f32 %v876_v26, %v465_v49  ;;  %v490_v52 = vmax.f32 %v482_v48, 0.0 }
 0x102   : > { %v488_v54 = vmax.f32 %v480_v51, 0.0  ;;  %v494_v57 = vpack.c.bf16 %v490_v52, %v489_v55 }
 0x104   : > { %v493_v56 = vpack.c.bf16 %v488_v54, %v487_v53 }
 0x106   : > { %962 = vmatprep.mubr.bf16.mxu1 %v493_v56 }
 0x107   : > { %963 = vmatmul.mubr.bf16.gmra.mxu1 %v494_v57 }
 0x1bf   : > { %v1206_v58 = vpop.f32.mrf.mxu1 }
 0x1c1   : > { %v1208_v59 = vpop.f32.mrf.mxu1 }
 0x1c3   : > { %v1210_v60 = vpop.f32.mrf.mxu1 }
 0x1c5   : > { %v1212_v61 = vpop.f32.mrf.mxu1 }
 0x1c7   : > { %v1214_v62 = vpop.f32.mrf.mxu1 }
 0x1c9   : > { %v1216_v63 = vpop.f32.mrf.mxu1  ;;  %627 = sbr.rel (%p885_p7) target bundleno = 464 (0x1d0), region = 44 }
 0x1cb   : > { %v1218_v0 = vpop.f32.mrf.mxu1 }
 0x1cd   : > { %v1220_v1 = vpop.f32.mrf.mxu1 }
 0x1ce   : > { %v1067_v2 = vmov 0.0  }
 0x1cf   : > { %628 = vst [vmem:[%s1150_s15] sm:$0xff] %v1067_v2  ;;  %629 = vst [vmem:[%s1155_s18] sm:$0xff] %v1067_v2 }
 0x1d0 PF: > { %s892_s30 = sshll.u32 %s1142_s9, 6 }
 0x1d1   : > { %s1228_s7 = sadd.s32 64, %s892_s30 }
 0x1d2   : > { %p887_p8 = scmp.gt.s32.totalorder %s1228_s7, 200 }
 0x1d4   : > { %635 = sbr.rel (%p887_p8) target bundleno = 504 (0x1f8), region = 48 }
 0x1d9   : > { %v637_v3 = vadd.f32 %v1212_v61, %v1208_v59  ;;  %v653_v4 = vmul.f32 %v1208_v59, %v1208_v59  ;;  %v654_v5 = vmul.f32 %v1212_v61, %v1212_v61  ;;  %v655_v6 = vmul.f32 %v1206_v58, %v1206_v58  ;;  %v636_v34 = vld [vmem:[%s1150_s15] sm:$0xff] }
 0x1da   : > { %v656_v8 = vmul.f32 %v1210_v60, %v1210_v60  ;;  %v657_v11 = vmul.f32 %v1216_v63, %v1216_v63  ;;  %v658_v14 = vmul.f32 %v1220_v1, %v1220_v1  ;;  %v659_v17 = vmul.f32 %v1214_v62, %v1214_v62  ;;  %v652_v37 = vld [vmem:[%s1155_s18] sm:$0xff] }
 0x1db   : > { %v638_v7 = vadd.f32 %v1206_v58, %v637_v3  ;;  %v661_v9 = vadd.f32 %v654_v5, %v653_v4  ;;  %v660_v20 = vmul.f32 %v1218_v0, %v1218_v0 }
 0x1dd   : > { %v639_v10 = vadd.f32 %v1210_v60, %v638_v7  ;;  %v662_v12 = vadd.f32 %v661_v9, %v655_v6 }
 0x1df   : > { %v640_v13 = vadd.f32 %v639_v10, %v1216_v63  ;;  %v663_v15 = vadd.f32 %v662_v12, %v656_v8 }
 0x1e1   : > { %v641_v16 = vadd.f32 %v640_v13, %v1220_v1  ;;  %v664_v18 = vadd.f32 %v663_v15, %v657_v11 }
 0x1e3   : > { %v642_v19 = vadd.f32 %v1214_v62, %v641_v16  ;;  %v665_v21 = vadd.f32 %v664_v18, %v658_v14 }
 0x1e5   : > { %v643_v22 = vadd.f32 %v1218_v0, %v642_v19  ;;  %v666_v23 = vadd.f32 %v665_v21, %v659_v17 }
 0x1e7   : > { %v644_v24 = vrot.slane %v643_v22, 4  ;;  %v667_v25 = vadd.f32 %v666_v23, %v660_v20 }
 0x1e9   : > { %v645_v26 = vadd.f32 %v644_v24, %v643_v22  ;;  %v668_v27 = vrot.slane %v667_v25, 4 }
 0x1eb   : > { %v646_v28 = vrot.slane %v645_v26, 2  ;;  %v669_v29 = vadd.f32 %v668_v27, %v667_v25 }
 0x1ed   : > { %v647_v30 = vadd.f32 %v646_v28, %v645_v26  ;;  %v670_v31 = vrot.slane %v669_v29, 2 }
 0x1ef   : > { %v648_v32 = vrot.slane %v647_v30, 1  ;;  %v671_v33 = vadd.f32 %v670_v31, %v669_v29 }
 0x1f1   : > { %v649_v35 = vadd.f32 %v648_v32, %v647_v30  ;;  %v672_v36 = vrot.slane %v671_v33, 1 }
 0x1f3   : > { %v650_v38 = vadd.f32 %v649_v35, %v636_v34  ;;  %v673_v39 = vadd.f32 %v672_v36, %v671_v33 }
 0x1f5   : > { %651 = vst [vmem:[%s1150_s15] sm:$0xff] %v650_v38  ;;  %v674_v40 = vadd.f32 %v673_v39, %v652_v37 }
 0x1f7   : > { %675 = vst [vmem:[%s1155_s18] sm:$0xff] %v674_v40 }
 0x1f8 PF: > { %p888_p9 = scmp.le.s32.totalorder %s1228_s7, 200 }
 0x1fa   : > { %679 = sbr.rel (%p888_p9) target bundleno = 552 (0x228), region = 52 }
 0x1ff   : > { %v681_v41 = vlaneseq  ;;  %v690_v43 = vstv %s892_s30  ;;  %v715_v33 = vld [vmem:[%s1150_s15] sm:$0xff] }
 0x200   : > { %v731_v38 = vld [vmem:[%s1155_s18] sm:$0xff] }
 0x201   : > { %v682_v42 = vshrl.u32 %v681_v41, 7 }
 0x203   : > { %v683_v44 = vadd.s32 8, %v682_v42  ;;  %v684_v45 = vadd.s32 16, %v682_v42  ;;  %v685_v46 = vadd.s32 24, %v682_v42  ;;  %v686_v47 = vadd.s32 32, %v682_v42 }
 0x204   : > { %v687_v48 = vadd.s32 40, %v682_v42  ;;  %v688_v49 = vadd.s32 48, %v682_v42  ;;  %v691_v50 = vadd.s32 %v690_v43, %v682_v42  ;;  %v689_v55 = vadd.s32 56, %v682_v42 }
 0x205   : > { %v692_v51 = vadd.s32 %v690_v43, %v683_v44  ;;  %v693_v52 = vadd.s32 %v690_v43, %v684_v45  ;;  %v694_v53 = vadd.s32 %v690_v43, %v685_v46  ;;  %v695_v54 = vadd.s32 %v690_v43, %v686_v47 }
 0x206   : > { %vm699_vm0 = vcmp.lt.s32.totalorder %v691_v50, 200  ;;  %v696_v56 = vadd.s32 %v690_v43, %v687_v48  ;;  %v697_v2 = vadd.s32 %v690_v43, %v688_v49  ;;  %v698_v5 = vadd.s32 %v690_v43, %v689_v55 }
 0x207   : > { %vm700_vm1 = vcmp.lt.s32.totalorder %v692_v51, 200  ;;  %vm701_vm2 = vcmp.lt.s32.totalorder %v693_v52, 200  ;;  %vm702_vm3 = vcmp.lt.s32.totalorder %v694_v53, 200  ;;  %v707_v57 = vsel %vm699_vm0, %v1208_v59, 0.0 }
 0x208   : > { %vm703_vm4 = vcmp.lt.s32.totalorder %v695_v54, 200  ;;  %v708_v3 = vsel %vm700_vm1, %v1212_v61, 0.0  ;;  %v709_v4 = vsel %vm701_vm2, %v1206_v58, 0.0  ;;  %v710_v6 = vsel %vm702_vm3, %v1210_v60, 0.0 }
 0x209   : > { %v716_v7 = vadd.f32 %v708_v3, %v707_v57  ;;  %vm704_vm5 = vcmp.lt.s32.totalorder %v696_v56, 200  ;;  %v732_v8 = vmul.f32 %v707_v57, %v707_v57  ;;  %v733_v9 = vmul.f32 %v708_v3, %v708_v3 }
 0x20a   : > { %v734_v10 = vmul.f32 %v709_v4, %v709_v4  ;;  %v711_v11 = vsel %vm703_vm4, %v1216_v63, 0.0  ;;  %vm705_vm6 = vcmp.lt.s32.totalorder %v697_v2, 200  ;;  %v735_v13 = vmul.f32 %v710_v6, %v710_v6 }
 0x20b   : > { %v717_v12 = vadd.f32 %v716_v7, %v709_v4  ;;  %v740_v59 = vadd.f32 %v733_v9, %v732_v8  ;;  %v712_v14 = vsel %vm704_vm5, %v1220_v1, 0.0  ;;  %vm706_vm7 = vcmp.lt.s32.totalorder %v698_v5, 200 }
 0x20c   : > { %v736_v61 = vmul.f32 %v711_v11, %v711_v11  ;;  %v713_v16 = vsel %vm705_vm6, %v1214_v62, 0.0  ;;  %v737_v17 = vmul.f32 %v712_v14, %v712_v14  ;;  %v714_v19 = vsel %vm706_vm7, %v1218_v0, 0.0 }
 0x20d   : > { %v718_v15 = vadd.f32 %v717_v12, %v710_v6  ;;  %v741_v58 = vadd.f32 %v740_v59, %v734_v10  ;;  %v738_v21 = vmul.f32 %v713_v16, %v713_v16  ;;  %v739_v23 = vmul.f32 %v714_v19, %v714_v19 }
 0x20f   : > { %v719_v60 = vadd.f32 %v718_v15, %v711_v11  ;;  %v742_v18 = vadd.f32 %v741_v58, %v735_v13 }
 0x211   : > { %v720_v20 = vadd.f32 %v719_v60, %v712_v14  ;;  %v743_v63 = vadd.f32 %v742_v18, %v736_v61 }
 0x213   : > { %v721_v22 = vadd.f32 %v720_v20, %v713_v16  ;;  %v744_v24 = vadd.f32 %v743_v63, %v737_v17 }
 0x215   : > { %v722_v25 = vadd.f32 %v721_v22, %v714_v19  ;;  %v745_v1 = vadd.f32 %v744_v24, %v738_v21 }
 0x217   : > { %v723_v26 = vrot.slane %v722_v25, 4  ;;  %v746_v27 = vadd.f32 %v745_v1, %v739_v23 }
 0x219   : > { %v724_v28 = vadd.f32 %v723_v26, %v722_v25  ;;  %v747_v62 = vrot.slane %v746_v27, 4 }
 0x21b   : > { %v725_v29 = vrot.slane %v724_v28, 2  ;;  %v748_v30 = vadd.f32 %v747_v62, %v746_v27 }
 0x21d   : > { %v726_v31 = vadd.f32 %v725_v29, %v724_v28  ;;  %v749_v0 = vrot.slane %v748_v30, 2 }
 0x21f   : > { %v727_v32 = vrot.slane %v726_v31, 1  ;;  %v750_v34 = vadd.f32 %v749_v0, %v748_v30 }
 0x221   : > { %v728_v35 = vadd.f32 %v727_v32, %v726_v31  ;;  %v751_v36 = vrot.slane %v750_v34, 1 }
 0x223   : > { %v729_v37 = vadd.f32 %v728_v35, %v715_v33  ;;  %v752_v39 = vadd.f32 %v751_v36, %v750_v34 }
 0x225   : > { %730 = vst [vmem:[%s1150_s15] sm:$0xff] %v729_v37  ;;  %v753_v40 = vadd.f32 %v752_v39, %v731_v38 }
 0x227   : > { %754 = vst [vmem:[%s1155_s18] sm:$0xff] %v753_v40 }
 0x228 PF: > { %s17_s25 = sadd.s32 1, %s1065_s25   ;;  %s1296_s21 = smov %s1057_s23 }
 0x229   : > { %p14_p10 = scmp.ge.s32.totalorder %s17_s25, 6   ;;  %s1297_s22 = smov %s1061_s24 }
 0x22a   : > { %s1298_s23 = smov %s1301_s26  ;;  %s1299_s24 = smov %s1305_s27 }
 0x22b   :  { %16 = sbr.rel (!%p14_p10) target bundleno = 3 (0x3), region = 94 }

</bundles_post_ra>
